<compile_context>
chip_gen: v7x
topology: tpu7x:2x2x1
jax: 0.10.0
libtpu: 0.0.40
codegen_flags: <defaults>
</compile_context>

<pallas_src>
import functools

import jax
import jax.numpy as jnp
from jax import lax
from jax.experimental import pallas as pl
from jax.experimental.pallas import tpu as pltpu


def _largest_tile(n, target, unit):
    """Largest t <= target with t % unit == 0 and n % t == 0; else n (full dim)."""
    if n <= target:
        return n
    best = n
    t = unit
    while t <= target:
        if n % t == 0:
            best = t
        t += unit
    return best


# ----------------------------------------------------------------------------
# In-kernel helper (transposed chol_orthogonalize):
#   given M (bs, D) rows, compute Y = R^{-T} M  where  R^T R = M M^T + eps*I
#   (upper Cholesky).  Y == U^T of the PyTorch chol_orthogonalize
#   (U = M^T @ inv(R)), kept transposed so D stays on the lane axis.
# ----------------------------------------------------------------------------
def _chol_orth_rows(m, *, bs, eps):
    # Gram (MXU): VV = M @ M^T  (contract over D).
    vv = lax.dot_general(m, m, (((1,), (1,)), ((), ())),
                         preferred_element_type=jnp.float32)          # (bs, bs)
    rows = lax.broadcasted_iota(jnp.int32, (bs, bs), 0)
    cols = lax.broadcasted_iota(jnp.int32, (bs, bs), 1)
    vv = vv + jnp.where(rows == cols, jnp.float32(eps), jnp.float32(0.0))

    # Upper Cholesky R (R^T R = vv), unrolled over the tiny bs rows.
    lane = lax.broadcasted_iota(jnp.int32, (1, bs), 1)
    r = jnp.zeros((bs, bs), jnp.float32)
    for j in range(bs):
        col_j = r[:, j:j + 1]                                         # R[k, j]
        s = jnp.sum(col_j * r, axis=0, keepdims=True)                 # (1, bs)
        row = vv[j:j + 1, :] - s                                      # (1, bs)
        new_row = row * lax.rsqrt(row[:, j:j + 1])                    # (1, bs)
        new_row = jnp.where(lane >= j, new_row, 0.0)                  # upper tri
        r = jnp.where(rows == j, new_row, r)                          # set row j

    # Forward substitution: solve R^T Y = M   (Y = R^{-T} M = U^T).
    y = jnp.zeros_like(m)                                             # (bs, D)
    row_ids = lax.broadcasted_iota(jnp.int32, (bs, 1), 0)
    for j in range(bs):
        col_j = r[:, j:j + 1]                                         # R[k, j]
        s = jnp.sum(col_j * y, axis=0, keepdims=True)                 # (1, D)
        yj = (m[j:j + 1, :] - s) / r[j:j + 1, j:j + 1]                # (1, D)
        y = jnp.where(row_ids == j, yj, y)                            # set row j
    return y


# ----------------------------------------------------------------------------
# Kernel 1 (fused): per-block orthogonalization + weighted iterative Frechet
# mean, carried transposed (fm^T, shape (out, D)), with a fused final
# re-orthonormalization on the last grid step.
#   fm'_0 = U_0^T ; fm'_i = (1-w_{i-1}) fm'_{i-1} + w_{i-1} (fm' U_i) U_i^T
# Output block index is constant across the grid axis -> resident accumulator.
# ----------------------------------------------------------------------------
def _grassmann_kernel(w_ref, x_ref, fmt_ref, *, bs, eps):
    i = pl.program_id(0)
    nb = pl.num_programs(0)

    # Orthogonalize block i in-register: U_i^T with D on the lane axis.
    ut = _chol_orth_rows(x_ref[0], bs=bs, eps=eps)          # (out, D)

    @pl.when(i == 0)
    def _():
        fmt_ref[...] = ut

    @pl.when(i > 0)
    def _():
        w = w_ref[i - 1]                                    # scalar from SMEM
        fmt = fmt_ref[...]                                  # (out, D) = fm^T
        # coeff^T = fm^T @ U   (contract D)
        coefft = lax.dot_general(fmt, ut, (((1,), (1,)), ((), ())),
                                 preferred_element_type=jnp.float32)  # (out,out)
        # proj^T = coeff^T @ U^T : lane-dense, N = D
        projt = jnp.dot(coefft, ut, preferred_element_type=jnp.float32)
        fmt_ref[...] = (1.0 - w) * fmt + w * projt

    @pl.when(i == nb - 1)
    def _():
        # fused final chol_orthogonalize(fm^T) epilogue
        fmt_ref[...] = _chol_orth_rows(fmt_ref[...], bs=bs, eps=eps)


def grassmann_frechet_pallas(blocks, weights, eps=0.01):
    nb, bs, d = blocks.shape
    return pl.pallas_call(
        functools.partial(_grassmann_kernel, bs=bs, eps=eps),
        out_shape=jax.ShapeDtypeStruct((bs, d), jnp.float32),
        grid=(nb,),
        in_specs=[pl.BlockSpec(memory_space=pltpu.MemorySpace.SMEM),
                  pl.BlockSpec((1, bs, d), lambda i: (i, 0, 0))],
        out_specs=pl.BlockSpec((bs, d), lambda i: (0, 0)),
        compiler_params=pltpu.CompilerParams(dimension_semantics=("arbitrary",)),
    )(weights, blocks)


# ----------------------------------------------------------------------------
# Kernel 2: temporalProjection  x @ subspace, tiled over rows (parallel) and
#           the contraction dim (arbitrary, last) with an f32 accumulator.
# ----------------------------------------------------------------------------
def _proj_kernel(x_ref, s_ref, o_ref, acc_ref):
    @pl.when(pl.program_id(1) == 0)
    def _():
        acc_ref[...] = jnp.zeros_like(acc_ref)

    acc_ref[...] += jnp.dot(x_ref[...], s_ref[...],
                            preferred_element_type=jnp.float32)

    @pl.when(pl.program_id(1) == pl.num_programs(1) - 1)
    def _():
        o_ref[...] = acc_ref[...].astype(o_ref.dtype)


def temporal_projection_pallas(x, subspace, *, tm_target=256, tk_target=512):
    m, d = x.shape
    out = subspace.shape[1]
    tm = _largest_tile(m, tm_target, 8)
    tk = _largest_tile(d, tk_target, 128)
    return pl.pallas_call(
        _proj_kernel,
        out_shape=jax.ShapeDtypeStruct((m, out), jnp.float32),
        grid=(m // tm, d // tk),
        in_specs=[pl.BlockSpec((tm, tk), lambda i, k: (i, k)),
                  pl.BlockSpec((tk, out), lambda i, k: (k, 0))],
        out_specs=pl.BlockSpec((tm, out), lambda i, k: (i, 0)),
        scratch_shapes=[pltpu.VMEM((tm, out), jnp.float32)],
        compiler_params=pltpu.CompilerParams(
            dimension_semantics=("parallel", "arbitrary")),
    )(x, subspace)


# ----------------------------------------------------------------------------
# GrassmannAverage forward
# ----------------------------------------------------------------------------
def grassmann_average_forward(x, weights, out_frames):
    in_frames, d = x.shape
    num_blocks = in_frames // out_frames
    block_size = in_frames // num_blocks                    # == out_frames

    blocks = x.reshape(num_blocks, block_size, d).astype(jnp.float32)
    fmt = grassmann_frechet_pallas(blocks, weights)          # (out, D) = fm^T
    fm = jnp.transpose(fmt)                                  # (D, out): module layout

    weight_reference = jnp.sum(
        jnp.array([1.0 / n for n in range(2, num_blocks + 2)], dtype=jnp.float32))
    weight_penalty = (weight_reference - jnp.sum(jnp.abs(weights))) ** 2
    return fm, weight_penalty


if __name__ == "__main__":
    key = jax.random.PRNGKey(0)

    # small shapes consistent with the module: in_frames divisible by out_frames
    in_frames, out_frames, feat_dim = 32, 8, 256
    num_blocks = in_frames // out_frames

    x = jax.random.normal(key, (in_frames, feat_dim), dtype=jnp.float32)
    # deterministic parameter init, exactly as in __init__
    weights = jnp.array([1.0 / n for n in range(2, num_blocks + 2)],
                        dtype=jnp.float32)

    fm, penalty = grassmann_average_forward(x, weights, out_frames)
    jax.block_until_ready((fm, penalty))

    # module .run(): temporal projection onto the learned subspace
    proj = temporal_projection_pallas(x, fm)
    jax.block_until_ready(proj)

    assert fm.shape == (feat_dim, out_frames)
    assert proj.shape == (in_frames, out_frames)
    assert penalty.shape == ()
    print("KERNEL_OK")
</pallas_src>

<mosaic_0001>
module attributes {stable_mosaic.version = 11 : i64} {
  func.func @_grassmann_kernel(%arg0: i32, %arg1: memref<4xf32, #tpu.memory_space<smem>>, %arg2: memref<1x8x256xf32, #tpu.memory_space<vmem>>, %arg3: memref<8x256xf32, #tpu.memory_space<vmem>>) attributes {dimension_semantics = [#tpu.dimension_semantics<arbitrary>], iteration_bounds = array<i64: 4>, scalar_prefetch = 0 : i64, scratch_operands = 0 : i64, tpu.core_type = #tpu.core_type<tc>, window_params = [{transform_indices = @transform_0, window_bounds = array<i64: 4>}, {transform_indices = @transform_1, window_bounds = array<i64: 1, 8, 256>}, {pipeline_mode = #tpu.pipeline_mode<synchronous>, transform_indices = @transform_2, window_bounds = array<i64: 8, 256>}]} {
    %c0 = arith.constant 0 : index
    %c0_0 = arith.constant 0 : index
    %c0_1 = arith.constant 0 : index
    %0 = vector.load %arg2[%c0, %c0_0, %c0_1] : memref<1x8x256xf32, #tpu.memory_space<vmem>>, vector<1x8x256xf32>
    %1 = vector.shape_cast %0 : vector<1x8x256xf32> to vector<8x256xf32>
    %cst = arith.constant dense<0.000000e+00> : vector<8x8xf32>
    %2 = tpu.matmul %1, %1, %cst {dimension_numbers = #tpu.dot_dimension_numbers<[1], [1], [0], [0], [0, 0, 1, 0], [], []>} : vector<8x256xf32>, vector<8x256xf32>, vector<8x8xf32> -> vector<8x8xf32>
    %3 = tpu.iota {dimensions = array<i32: 0>} : vector<8x8xi32>
    %4 = tpu.iota {dimensions = array<i32: 1>} : vector<8x8xi32>
    %5 = arith.cmpi eq, %3, %4 : vector<8x8xi32>
    %cst_2 = arith.constant 0.00999999977 : f32
    %cst_3 = arith.constant 0.000000e+00 : f32
    %6 = vector.broadcast %cst_2 : f32 to vector<8x8xf32>
    %7 = vector.broadcast %cst_3 : f32 to vector<8x8xf32>
    %8 = arith.select %5, %6, %7 : vector<8x8xi1>, vector<8x8xf32>
    %9 = arith.addf %2, %8 : vector<8x8xf32>
    %10 = tpu.iota {dimensions = array<i32: 1>} : vector<1x8xi32>
    %cst_4 = arith.constant 0.000000e+00 : f32
    %11 = vector.broadcast %cst_4 : f32 to vector<8x8xf32>
    %12 = vector.extract_strided_slice %11 {offsets = [0, 0], sizes = [8, 1], strides = [1, 1]} : vector<8x8xf32> to vector<8x1xf32>
    %13 = vector.broadcast %12 : vector<8x1xf32> to vector<8x8xf32>
    %14 = arith.mulf %13, %11 : vector<8x8xf32>
    %cst_5 = arith.constant dense<0.000000e+00> : vector<8xf32>
    %15 = vector.multi_reduction <add>, %14, %cst_5 [0] : vector<8x8xf32> to vector<8xf32>
    %16 = vector.shape_cast %15 : vector<8xf32> to vector<1x8xf32>
    %17 = vector.extract_strided_slice %9 {offsets = [0, 0], sizes = [1, 8], strides = [1, 1]} : vector<8x8xf32> to vector<1x8xf32>
    %18 = arith.subf %17, %16 : vector<1x8xf32>
    %19 = vector.extract_strided_slice %18 {offsets = [0, 0], sizes = [1, 1], strides = [1, 1]} : vector<1x8xf32> to vector<1x1xf32>
    %20 = math.rsqrt %19 : vector<1x1xf32>
    %21 = vector.broadcast %20 : vector<1x1xf32> to vector<1x8xf32>
    %22 = arith.mulf %18, %21 : vector<1x8xf32>
    %c0_i32 = arith.constant 0 : i32
    %23 = vector.broadcast %c0_i32 : i32 to vector<1x8xi32>
    %24 = arith.cmpi sge, %10, %23 : vector<1x8xi32>
    %cst_6 = arith.constant 0.000000e+00 : f32
    %25 = vector.broadcast %cst_6 : f32 to vector<1x8xf32>
    %26 = arith.select %24, %22, %25 : vector<1x8xi1>, vector<1x8xf32>
    %c0_i32_7 = arith.constant 0 : i32
    %27 = vector.broadcast %c0_i32_7 : i32 to vector<8x8xi32>
    %28 = arith.cmpi eq, %3, %27 : vector<8x8xi32>
    %29 = vector.shape_cast %26 : vector<1x8xf32> to vector<1x8xf32>
    %30 = vector.broadcast %29 : vector<1x8xf32> to vector<8x8xf32>
    %31 = arith.select %28, %30, %11 : vector<8x8xi1>, vector<8x8xf32>
    %32 = vector.extract_strided_slice %31 {offsets = [0, 1], sizes = [8, 1], strides = [1, 1]} : vector<8x8xf32> to vector<8x1xf32>
    %33 = vector.broadcast %32 : vector<8x1xf32> to vector<8x8xf32>
    %34 = arith.mulf %33, %31 : vector<8x8xf32>
    %cst_8 = arith.constant dense<0.000000e+00> : vector<8xf32>
    %35 = vector.multi_reduction <add>, %34, %cst_8 [0] : vector<8x8xf32> to vector<8xf32>
    %36 = vector.shape_cast %35 : vector<8xf32> to vector<1x8xf32>
    %37 = vector.extract_strided_slice %9 {offsets = [1, 0], sizes = [1, 8], strides = [1, 1]} : vector<8x8xf32> to vector<1x8xf32>
    %38 = arith.subf %37, %36 : vector<1x8xf32>
    %39 = vector.extract_strided_slice %38 {offsets = [0, 1], sizes = [1, 1], strides = [1, 1]} : vector<1x8xf32> to vector<1x1xf32>
    %40 = math.rsqrt %39 : vector<1x1xf32>
    %41 = vector.broadcast %40 : vector<1x1xf32> to vector<1x8xf32>
    %42 = arith.mulf %38, %41 : vector<1x8xf32>
    %c1_i32 = arith.constant 1 : i32
    %43 = vector.broadcast %c1_i32 : i32 to vector<1x8xi32>
    %44 = arith.cmpi sge, %10, %43 : vector<1x8xi32>
    %cst_9 = arith.constant 0.000000e+00 : f32
    %45 = vector.broadcast %cst_9 : f32 to vector<1x8xf32>
    %46 = arith.select %44, %42, %45 : vector<1x8xi1>, vector<1x8xf32>
    %c1_i32_10 = arith.constant 1 : i32
    %47 = vector.broadcast %c1_i32_10 : i32 to vector<8x8xi32>
    %48 = arith.cmpi eq, %3, %47 : vector<8x8xi32>
    %49 = vector.shape_cast %46 : vector<1x8xf32> to vector<1x8xf32>
    %50 = vector.broadcast %49 : vector<1x8xf32> to vector<8x8xf32>
    %51 = arith.select %48, %50, %31 : vector<8x8xi1>, vector<8x8xf32>
    %52 = vector.extract_strided_slice %51 {offsets = [0, 2], sizes = [8, 1], strides = [1, 1]} : vector<8x8xf32> to vector<8x1xf32>
    %53 = vector.broadcast %52 : vector<8x1xf32> to vector<8x8xf32>
    %54 = arith.mulf %53, %51 : vector<8x8xf32>
    %cst_11 = arith.constant dense<0.000000e+00> : vector<8xf32>
    %55 = vector.multi_reduction <add>, %54, %cst_11 [0] : vector<8x8xf32> to vector<8xf32>
    %56 = vector.shape_cast %55 : vector<8xf32> to vector<1x8xf32>
    %57 = vector.extract_strided_slice %9 {offsets = [2, 0], sizes = [1, 8], strides = [1, 1]} : vector<8x8xf32> to vector<1x8xf32>
    %58 = arith.subf %57, %56 : vector<1x8xf32>
    %59 = vector.extract_strided_slice %58 {offsets = [0, 2], sizes = [1, 1], strides = [1, 1]} : vector<1x8xf32> to vector<1x1xf32>
    %60 = math.rsqrt %59 : vector<1x1xf32>
    %61 = vector.broadcast %60 : vector<1x1xf32> to vector<1x8xf32>
    %62 = arith.mulf %58, %61 : vector<1x8xf32>
    %c2_i32 = arith.constant 2 : i32
    %63 = vector.broadcast %c2_i32 : i32 to vector<1x8xi32>
    %64 = arith.cmpi sge, %10, %63 : vector<1x8xi32>
    %cst_12 = arith.constant 0.000000e+00 : f32
    %65 = vector.broadcast %cst_12 : f32 to vector<1x8xf32>
    %66 = arith.select %64, %62, %65 : vector<1x8xi1>, vector<1x8xf32>
    %c2_i32_13 = arith.constant 2 : i32
    %67 = vector.broadcast %c2_i32_13 : i32 to vector<8x8xi32>
    %68 = arith.cmpi eq, %3, %67 : vector<8x8xi32>
    %69 = vector.shape_cast %66 : vector<1x8xf32> to vector<1x8xf32>
    %70 = vector.broadcast %69 : vector<1x8xf32> to vector<8x8xf32>
    %71 = arith.select %68, %70, %51 : vector<8x8xi1>, vector<8x8xf32>
    %72 = vector.extract_strided_slice %71 {offsets = [0, 3], sizes = [8, 1], strides = [1, 1]} : vector<8x8xf32> to vector<8x1xf32>
    %73 = vector.broadcast %72 : vector<8x1xf32> to vector<8x8xf32>
    %74 = arith.mulf %73, %71 : vector<8x8xf32>
    %cst_14 = arith.constant dense<0.000000e+00> : vector<8xf32>
    %75 = vector.multi_reduction <add>, %74, %cst_14 [0] : vector<8x8xf32> to vector<8xf32>
    %76 = vector.shape_cast %75 : vector<8xf32> to vector<1x8xf32>
    %77 = vector.extract_strided_slice %9 {offsets = [3, 0], sizes = [1, 8], strides = [1, 1]} : vector<8x8xf32> to vector<1x8xf32>
    %78 = arith.subf %77, %76 : vector<1x8xf32>
    %79 = vector.extract_strided_slice %78 {offsets = [0, 3], sizes = [1, 1], strides = [1, 1]} : vector<1x8xf32> to vector<1x1xf32>
    %80 = math.rsqrt %79 : vector<1x1xf32>
    %81 = vector.broadcast %80 : vector<1x1xf32> to vector<1x8xf32>
    %82 = arith.mulf %78, %81 : vector<1x8xf32>
    %c3_i32 = arith.constant 3 : i32
    %83 = vector.broadcast %c3_i32 : i32 to vector<1x8xi32>
    %84 = arith.cmpi sge, %10, %83 : vector<1x8xi32>
    %cst_15 = arith.constant 0.000000e+00 : f32
    %85 = vector.broadcast %cst_15 : f32 to vector<1x8xf32>
    %86 = arith.select %84, %82, %85 : vector<1x8xi1>, vector<1x8xf32>
    %c3_i32_16 = arith.constant 3 : i32
    %87 = vector.broadcast %c3_i32_16 : i32 to vector<8x8xi32>
    %88 = arith.cmpi eq, %3, %87 : vector<8x8xi32>
    %89 = vector.shape_cast %86 : vector<1x8xf32> to vector<1x8xf32>
    %90 = vector.broadcast %89 : vector<1x8xf32> to vector<8x8xf32>
    %91 = arith.select %88, %90, %71 : vector<8x8xi1>, vector<8x8xf32>
    %92 = vector.extract_strided_slice %91 {offsets = [0, 4], sizes = [8, 1], strides = [1, 1]} : vector<8x8xf32> to vector<8x1xf32>
    %93 = vector.broadcast %92 : vector<8x1xf32> to vector<8x8xf32>
    %94 = arith.mulf %93, %91 : vector<8x8xf32>
    %cst_17 = arith.constant dense<0.000000e+00> : vector<8xf32>
    %95 = vector.multi_reduction <add>, %94, %cst_17 [0] : vector<8x8xf32> to vector<8xf32>
    %96 = vector.shape_cast %95 : vector<8xf32> to vector<1x8xf32>
    %97 = vector.extract_strided_slice %9 {offsets = [4, 0], sizes = [1, 8], strides = [1, 1]} : vector<8x8xf32> to vector<1x8xf32>
    %98 = arith.subf %97, %96 : vector<1x8xf32>
    %99 = vector.extract_strided_slice %98 {offsets = [0, 4], sizes = [1, 1], strides = [1, 1]} : vector<1x8xf32> to vector<1x1xf32>
    %100 = math.rsqrt %99 : vector<1x1xf32>
    %101 = vector.broadcast %100 : vector<1x1xf32> to vector<1x8xf32>
    %102 = arith.mulf %98, %101 : vector<1x8xf32>
    %c4_i32 = arith.constant 4 : i32
    %103 = vector.broadcast %c4_i32 : i32 to vector<1x8xi32>
    %104 = arith.cmpi sge, %10, %103 : vector<1x8xi32>
    %cst_18 = arith.constant 0.000000e+00 : f32
    %105 = vector.broadcast %cst_18 : f32 to vector<1x8xf32>
    %106 = arith.select %104, %102, %105 : vector<1x8xi1>, vector<1x8xf32>
    %c4_i32_19 = arith.constant 4 : i32
    %107 = vector.broadcast %c4_i32_19 : i32 to vector<8x8xi32>
    %108 = arith.cmpi eq, %3, %107 : vector<8x8xi32>
    %109 = vector.shape_cast %106 : vector<1x8xf32> to vector<1x8xf32>
    %110 = vector.broadcast %109 : vector<1x8xf32> to vector<8x8xf32>
    %111 = arith.select %108, %110, %91 : vector<8x8xi1>, vector<8x8xf32>
    %112 = vector.extract_strided_slice %111 {offsets = [0, 5], sizes = [8, 1], strides = [1, 1]} : vector<8x8xf32> to vector<8x1xf32>
    %113 = vector.broadcast %112 : vector<8x1xf32> to vector<8x8xf32>
    %114 = arith.mulf %113, %111 : vector<8x8xf32>
    %cst_20 = arith.constant dense<0.000000e+00> : vector<8xf32>
    %115 = vector.multi_reduction <add>, %114, %cst_20 [0] : vector<8x8xf32> to vector<8xf32>
    %116 = vector.shape_cast %115 : vector<8xf32> to vector<1x8xf32>
    %117 = vector.extract_strided_slice %9 {offsets = [5, 0], sizes = [1, 8], strides = [1, 1]} : vector<8x8xf32> to vector<1x8xf32>
    %118 = arith.subf %117, %116 : vector<1x8xf32>
    %119 = vector.extract_strided_slice %118 {offsets = [0, 5], sizes = [1, 1], strides = [1, 1]} : vector<1x8xf32> to vector<1x1xf32>
    %120 = math.rsqrt %119 : vector<1x1xf32>
    %121 = vector.broadcast %120 : vector<1x1xf32> to vector<1x8xf32>
    %122 = arith.mulf %118, %121 : vector<1x8xf32>
    %c5_i32 = arith.constant 5 : i32
    %123 = vector.broadcast %c5_i32 : i32 to vector<1x8xi32>
    %124 = arith.cmpi sge, %10, %123 : vector<1x8xi32>
    %cst_21 = arith.constant 0.000000e+00 : f32
    %125 = vector.broadcast %cst_21 : f32 to vector<1x8xf32>
    %126 = arith.select %124, %122, %125 : vector<1x8xi1>, vector<1x8xf32>
    %c5_i32_22 = arith.constant 5 : i32
    %127 = vector.broadcast %c5_i32_22 : i32 to vector<8x8xi32>
    %128 = arith.cmpi eq, %3, %127 : vector<8x8xi32>
    %129 = vector.shape_cast %126 : vector<1x8xf32> to vector<1x8xf32>
    %130 = vector.broadcast %129 : vector<1x8xf32> to vector<8x8xf32>
    %131 = arith.select %128, %130, %111 : vector<8x8xi1>, vector<8x8xf32>
    %132 = vector.extract_strided_slice %131 {offsets = [0, 6], sizes = [8, 1], strides = [1, 1]} : vector<8x8xf32> to vector<8x1xf32>
    %133 = vector.broadcast %132 : vector<8x1xf32> to vector<8x8xf32>
    %134 = arith.mulf %133, %131 : vector<8x8xf32>
    %cst_23 = arith.constant dense<0.000000e+00> : vector<8xf32>
    %135 = vector.multi_reduction <add>, %134, %cst_23 [0] : vector<8x8xf32> to vector<8xf32>
    %136 = vector.shape_cast %135 : vector<8xf32> to vector<1x8xf32>
    %137 = vector.extract_strided_slice %9 {offsets = [6, 0], sizes = [1, 8], strides = [1, 1]} : vector<8x8xf32> to vector<1x8xf32>
    %138 = arith.subf %137, %136 : vector<1x8xf32>
    %139 = vector.extract_strided_slice %138 {offsets = [0, 6], sizes = [1, 1], strides = [1, 1]} : vector<1x8xf32> to vector<1x1xf32>
    %140 = math.rsqrt %139 : vector<1x1xf32>
    %141 = vector.broadcast %140 : vector<1x1xf32> to vector<1x8xf32>
    %142 = arith.mulf %138, %141 : vector<1x8xf32>
    %c6_i32 = arith.constant 6 : i32
    %143 = vector.broadcast %c6_i32 : i32 to vector<1x8xi32>
    %144 = arith.cmpi sge, %10, %143 : vector<1x8xi32>
    %cst_24 = arith.constant 0.000000e+00 : f32
    %145 = vector.broadcast %cst_24 : f32 to vector<1x8xf32>
    %146 = arith.select %144, %142, %145 : vector<1x8xi1>, vector<1x8xf32>
    %c6_i32_25 = arith.constant 6 : i32
    %147 = vector.broadcast %c6_i32_25 : i32 to vector<8x8xi32>
    %148 = arith.cmpi eq, %3, %147 : vector<8x8xi32>
    %149 = vector.shape_cast %146 : vector<1x8xf32> to vector<1x8xf32>
    %150 = vector.broadcast %149 : vector<1x8xf32> to vector<8x8xf32>
    %151 = arith.select %148, %150, %131 : vector<8x8xi1>, vector<8x8xf32>
    %152 = vector.extract_strided_slice %151 {offsets = [0, 7], sizes = [8, 1], strides = [1, 1]} : vector<8x8xf32> to vector<8x1xf32>
    %153 = vector.broadcast %152 : vector<8x1xf32> to vector<8x8xf32>
    %154 = arith.mulf %153, %151 : vector<8x8xf32>
    %cst_26 = arith.constant dense<0.000000e+00> : vector<8xf32>
    %155 = vector.multi_reduction <add>, %154, %cst_26 [0] : vector<8x8xf32> to vector<8xf32>
    %156 = vector.shape_cast %155 : vector<8xf32> to vector<1x8xf32>
    %157 = vector.extract_strided_slice %9 {offsets = [7, 0], sizes = [1, 8], strides = [1, 1]} : vector<8x8xf32> to vector<1x8xf32>
    %158 = arith.subf %157, %156 : vector<1x8xf32>
    %159 = vector.extract_strided_slice %158 {offsets = [0, 7], sizes = [1, 1], strides = [1, 1]} : vector<1x8xf32> to vector<1x1xf32>
    %160 = math.rsqrt %159 : vector<1x1xf32>
    %161 = vector.broadcast %160 : vector<1x1xf32> to vector<1x8xf32>
    %162 = arith.mulf %158, %161 : vector<1x8xf32>
    %c7_i32 = arith.constant 7 : i32
    %163 = vector.broadcast %c7_i32 : i32 to vector<1x8xi32>
    %164 = arith.cmpi sge, %10, %163 : vector<1x8xi32>
    %cst_27 = arith.constant 0.000000e+00 : f32
    %165 = vector.broadcast %cst_27 : f32 to vector<1x8xf32>
    %166 = arith.select %164, %162, %165 : vector<1x8xi1>, vector<1x8xf32>
    %c7_i32_28 = arith.constant 7 : i32
    %167 = vector.broadcast %c7_i32_28 : i32 to vector<8x8xi32>
    %168 = arith.cmpi eq, %3, %167 : vector<8x8xi32>
    %169 = vector.shape_cast %166 : vector<1x8xf32> to vector<1x8xf32>
    %170 = vector.broadcast %169 : vector<1x8xf32> to vector<8x8xf32>
    %171 = arith.select %168, %170, %151 : vector<8x8xi1>, vector<8x8xf32>
    %cst_29 = arith.constant 0.000000e+00 : f32
    %172 = vector.broadcast %cst_29 : f32 to vector<8x256xf32>
    %173 = tpu.iota {dimensions = array<i32: 0>} : vector<8x1xi32>
    %174 = vector.extract_strided_slice %171 {offsets = [0, 0], sizes = [8, 1], strides = [1, 1]} : vector<8x8xf32> to vector<8x1xf32>
    %175 = vector.broadcast %174 : vector<8x1xf32> to vector<8x256xf32>
    %176 = arith.mulf %175, %172 : vector<8x256xf32>
    %cst_30 = arith.constant dense<0.000000e+00> : vector<256xf32>
    %177 = vector.multi_reduction <add>, %176, %cst_30 [0] : vector<8x256xf32> to vector<256xf32>
    %178 = vector.shape_cast %177 : vector<256xf32> to vector<1x256xf32>
    %179 = vector.extract_strided_slice %1 {offsets = [0, 0], sizes = [1, 256], strides = [1, 1]} : vector<8x256xf32> to vector<1x256xf32>
    %180 = arith.subf %179, %178 : vector<1x256xf32>
    %181 = vector.extract_strided_slice %171 {offsets = [0, 0], sizes = [1, 1], strides = [1, 1]} : vector<8x8xf32> to vector<1x1xf32>
    %182 = vector.broadcast %181 : vector<1x1xf32> to vector<1x256xf32>
    %183 = arith.divf %180, %182 : vector<1x256xf32>
    %c0_i32_31 = arith.constant 0 : i32
    %184 = vector.broadcast %c0_i32_31 : i32 to vector<8x1xi32>
    %185 = arith.cmpi eq, %173, %184 : vector<8x1xi32>
    %186 = vector.shape_cast %185 : vector<8x1xi1> to vector<8x1xi1>
    %187 = vector.broadcast %186 : vector<8x1xi1> to vector<8x256xi1>
    %188 = vector.shape_cast %183 : vector<1x256xf32> to vector<1x256xf32>
    %189 = vector.broadcast %188 : vector<1x256xf32> to vector<8x256xf32>
    %190 = arith.select %187, %189, %172 : vector<8x256xi1>, vector<8x256xf32>
    %191 = vector.extract_strided_slice %171 {offsets = [0, 1], sizes = [8, 1], strides = [1, 1]} : vector<8x8xf32> to vector<8x1xf32>
    %192 = vector.broadcast %191 : vector<8x1xf32> to vector<8x256xf32>
    %193 = arith.mulf %192, %190 : vector<8x256xf32>
    %cst_32 = arith.constant dense<0.000000e+00> : vector<256xf32>
    %194 = vector.multi_reduction <add>, %193, %cst_32 [0] : vector<8x256xf32> to vector<256xf32>
    %195 = vector.shape_cast %194 : vector<256xf32> to vector<1x256xf32>
    %196 = vector.extract_strided_slice %1 {offsets = [1, 0], sizes = [1, 256], strides = [1, 1]} : vector<8x256xf32> to vector<1x256xf32>
    %197 = arith.subf %196, %195 : vector<1x256xf32>
    %198 = vector.extract_strided_slice %171 {offsets = [1, 1], sizes = [1, 1], strides = [1, 1]} : vector<8x8xf32> to vector<1x1xf32>
    %199 = vector.broadcast %198 : vector<1x1xf32> to vector<1x256xf32>
    %200 = arith.divf %197, %199 : vector<1x256xf32>
    %c1_i32_33 = arith.constant 1 : i32
    %201 = vector.broadcast %c1_i32_33 : i32 to vector<8x1xi32>
    %202 = arith.cmpi eq, %173, %201 : vector<8x1xi32>
    %203 = vector.shape_cast %202 : vector<8x1xi1> to vector<8x1xi1>
    %204 = vector.broadcast %203 : vector<8x1xi1> to vector<8x256xi1>
    %205 = vector.shape_cast %200 : vector<1x256xf32> to vector<1x256xf32>
    %206 = vector.broadcast %205 : vector<1x256xf32> to vector<8x256xf32>
    %207 = arith.select %204, %206, %190 : vector<8x256xi1>, vector<8x256xf32>
    %208 = vector.extract_strided_slice %171 {offsets = [0, 2], sizes = [8, 1], strides = [1, 1]} : vector<8x8xf32> to vector<8x1xf32>
    %209 = vector.broadcast %208 : vector<8x1xf32> to vector<8x256xf32>
    %210 = arith.mulf %209, %207 : vector<8x256xf32>
    %cst_34 = arith.constant dense<0.000000e+00> : vector<256xf32>
    %211 = vector.multi_reduction <add>, %210, %cst_34 [0] : vector<8x256xf32> to vector<256xf32>
    %212 = vector.shape_cast %211 : vector<256xf32> to vector<1x256xf32>
    %213 = vector.extract_strided_slice %1 {offsets = [2, 0], sizes = [1, 256], strides = [1, 1]} : vector<8x256xf32> to vector<1x256xf32>
    %214 = arith.subf %213, %212 : vector<1x256xf32>
    %215 = vector.extract_strided_slice %171 {offsets = [2, 2], sizes = [1, 1], strides = [1, 1]} : vector<8x8xf32> to vector<1x1xf32>
    %216 = vector.broadcast %215 : vector<1x1xf32> to vector<1x256xf32>
    %217 = arith.divf %214, %216 : vector<1x256xf32>
    %c2_i32_35 = arith.constant 2 : i32
    %218 = vector.broadcast %c2_i32_35 : i32 to vector<8x1xi32>
    %219 = arith.cmpi eq, %173, %218 : vector<8x1xi32>
    %220 = vector.shape_cast %219 : vector<8x1xi1> to vector<8x1xi1>
    %221 = vector.broadcast %220 : vector<8x1xi1> to vector<8x256xi1>
    %222 = vector.shape_cast %217 : vector<1x256xf32> to vector<1x256xf32>
    %223 = vector.broadcast %222 : vector<1x256xf32> to vector<8x256xf32>
    %224 = arith.select %221, %223, %207 : vector<8x256xi1>, vector<8x256xf32>
    %225 = vector.extract_strided_slice %171 {offsets = [0, 3], sizes = [8, 1], strides = [1, 1]} : vector<8x8xf32> to vector<8x1xf32>
    %226 = vector.broadcast %225 : vector<8x1xf32> to vector<8x256xf32>
    %227 = arith.mulf %226, %224 : vector<8x256xf32>
    %cst_36 = arith.constant dense<0.000000e+00> : vector<256xf32>
    %228 = vector.multi_reduction <add>, %227, %cst_36 [0] : vector<8x256xf32> to vector<256xf32>
    %229 = vector.shape_cast %228 : vector<256xf32> to vector<1x256xf32>
    %230 = vector.extract_strided_slice %1 {offsets = [3, 0], sizes = [1, 256], strides = [1, 1]} : vector<8x256xf32> to vector<1x256xf32>
    %231 = arith.subf %230, %229 : vector<1x256xf32>
    %232 = vector.extract_strided_slice %171 {offsets = [3, 3], sizes = [1, 1], strides = [1, 1]} : vector<8x8xf32> to vector<1x1xf32>
    %233 = vector.broadcast %232 : vector<1x1xf32> to vector<1x256xf32>
    %234 = arith.divf %231, %233 : vector<1x256xf32>
    %c3_i32_37 = arith.constant 3 : i32
    %235 = vector.broadcast %c3_i32_37 : i32 to vector<8x1xi32>
    %236 = arith.cmpi eq, %173, %235 : vector<8x1xi32>
    %237 = vector.shape_cast %236 : vector<8x1xi1> to vector<8x1xi1>
    %238 = vector.broadcast %237 : vector<8x1xi1> to vector<8x256xi1>
    %239 = vector.shape_cast %234 : vector<1x256xf32> to vector<1x256xf32>
    %240 = vector.broadcast %239 : vector<1x256xf32> to vector<8x256xf32>
    %241 = arith.select %238, %240, %224 : vector<8x256xi1>, vector<8x256xf32>
    %242 = vector.extract_strided_slice %171 {offsets = [0, 4], sizes = [8, 1], strides = [1, 1]} : vector<8x8xf32> to vector<8x1xf32>
    %243 = vector.broadcast %242 : vector<8x1xf32> to vector<8x256xf32>
    %244 = arith.mulf %243, %241 : vector<8x256xf32>
    %cst_38 = arith.constant dense<0.000000e+00> : vector<256xf32>
    %245 = vector.multi_reduction <add>, %244, %cst_38 [0] : vector<8x256xf32> to vector<256xf32>
    %246 = vector.shape_cast %245 : vector<256xf32> to vector<1x256xf32>
    %247 = vector.extract_strided_slice %1 {offsets = [4, 0], sizes = [1, 256], strides = [1, 1]} : vector<8x256xf32> to vector<1x256xf32>
    %248 = arith.subf %247, %246 : vector<1x256xf32>
    %249 = vector.extract_strided_slice %171 {offsets = [4, 4], sizes = [1, 1], strides = [1, 1]} : vector<8x8xf32> to vector<1x1xf32>
    %250 = vector.broadcast %249 : vector<1x1xf32> to vector<1x256xf32>
    %251 = arith.divf %248, %250 : vector<1x256xf32>
    %c4_i32_39 = arith.constant 4 : i32
    %252 = vector.broadcast %c4_i32_39 : i32 to vector<8x1xi32>
    %253 = arith.cmpi eq, %173, %252 : vector<8x1xi32>
    %254 = vector.shape_cast %253 : vector<8x1xi1> to vector<8x1xi1>
    %255 = vector.broadcast %254 : vector<8x1xi1> to vector<8x256xi1>
    %256 = vector.shape_cast %251 : vector<1x256xf32> to vector<1x256xf32>
    %257 = vector.broadcast %256 : vector<1x256xf32> to vector<8x256xf32>
    %258 = arith.select %255, %257, %241 : vector<8x256xi1>, vector<8x256xf32>
    %259 = vector.extract_strided_slice %171 {offsets = [0, 5], sizes = [8, 1], strides = [1, 1]} : vector<8x8xf32> to vector<8x1xf32>
    %260 = vector.broadcast %259 : vector<8x1xf32> to vector<8x256xf32>
    %261 = arith.mulf %260, %258 : vector<8x256xf32>
    %cst_40 = arith.constant dense<0.000000e+00> : vector<256xf32>
    %262 = vector.multi_reduction <add>, %261, %cst_40 [0] : vector<8x256xf32> to vector<256xf32>
    %263 = vector.shape_cast %262 : vector<256xf32> to vector<1x256xf32>
    %264 = vector.extract_strided_slice %1 {offsets = [5, 0], sizes = [1, 256], strides = [1, 1]} : vector<8x256xf32> to vector<1x256xf32>
    %265 = arith.subf %264, %263 : vector<1x256xf32>
    %266 = vector.extract_strided_slice %171 {offsets = [5, 5], sizes = [1, 1], strides = [1, 1]} : vector<8x8xf32> to vector<1x1xf32>
    %267 = vector.broadcast %266 : vector<1x1xf32> to vector<1x256xf32>
    %268 = arith.divf %265, %267 : vector<1x256xf32>
    %c5_i32_41 = arith.constant 5 : i32
    %269 = vector.broadcast %c5_i32_41 : i32 to vector<8x1xi32>
    %270 = arith.cmpi eq, %173, %269 : vector<8x1xi32>
    %271 = vector.shape_cast %270 : vector<8x1xi1> to vector<8x1xi1>
    %272 = vector.broadcast %271 : vector<8x1xi1> to vector<8x256xi1>
    %273 = vector.shape_cast %268 : vector<1x256xf32> to vector<1x256xf32>
    %274 = vector.broadcast %273 : vector<1x256xf32> to vector<8x256xf32>
    %275 = arith.select %272, %274, %258 : vector<8x256xi1>, vector<8x256xf32>
    %276 = vector.extract_strided_slice %171 {offsets = [0, 6], sizes = [8, 1], strides = [1, 1]} : vector<8x8xf32> to vector<8x1xf32>
    %277 = vector.broadcast %276 : vector<8x1xf32> to vector<8x256xf32>
    %278 = arith.mulf %277, %275 : vector<8x256xf32>
    %cst_42 = arith.constant dense<0.000000e+00> : vector<256xf32>
    %279 = vector.multi_reduction <add>, %278, %cst_42 [0] : vector<8x256xf32> to vector<256xf32>
    %280 = vector.shape_cast %279 : vector<256xf32> to vector<1x256xf32>
    %281 = vector.extract_strided_slice %1 {offsets = [6, 0], sizes = [1, 256], strides = [1, 1]} : vector<8x256xf32> to vector<1x256xf32>
    %282 = arith.subf %281, %280 : vector<1x256xf32>
    %283 = vector.extract_strided_slice %171 {offsets = [6, 6], sizes = [1, 1], strides = [1, 1]} : vector<8x8xf32> to vector<1x1xf32>
    %284 = vector.broadcast %283 : vector<1x1xf32> to vector<1x256xf32>
    %285 = arith.divf %282, %284 : vector<1x256xf32>
    %c6_i32_43 = arith.constant 6 : i32
    %286 = vector.broadcast %c6_i32_43 : i32 to vector<8x1xi32>
    %287 = arith.cmpi eq, %173, %286 : vector<8x1xi32>
    %288 = vector.shape_cast %287 : vector<8x1xi1> to vector<8x1xi1>
    %289 = vector.broadcast %288 : vector<8x1xi1> to vector<8x256xi1>
    %290 = vector.shape_cast %285 : vector<1x256xf32> to vector<1x256xf32>
    %291 = vector.broadcast %290 : vector<1x256xf32> to vector<8x256xf32>
    %292 = arith.select %289, %291, %275 : vector<8x256xi1>, vector<8x256xf32>
    %293 = vector.extract_strided_slice %171 {offsets = [0, 7], sizes = [8, 1], strides = [1, 1]} : vector<8x8xf32> to vector<8x1xf32>
    %294 = vector.broadcast %293 : vector<8x1xf32> to vector<8x256xf32>
    %295 = arith.mulf %294, %292 : vector<8x256xf32>
    %cst_44 = arith.constant dense<0.000000e+00> : vector<256xf32>
    %296 = vector.multi_reduction <add>, %295, %cst_44 [0] : vector<8x256xf32> to vector<256xf32>
    %297 = vector.shape_cast %296 : vector<256xf32> to vector<1x256xf32>
    %298 = vector.extract_strided_slice %1 {offsets = [7, 0], sizes = [1, 256], strides = [1, 1]} : vector<8x256xf32> to vector<1x256xf32>
    %299 = arith.subf %298, %297 : vector<1x256xf32>
    %300 = vector.extract_strided_slice %171 {offsets = [7, 7], sizes = [1, 1], strides = [1, 1]} : vector<8x8xf32> to vector<1x1xf32>
    %301 = vector.broadcast %300 : vector<1x1xf32> to vector<1x256xf32>
    %302 = arith.divf %299, %301 : vector<1x256xf32>
    %c7_i32_45 = arith.constant 7 : i32
    %303 = vector.broadcast %c7_i32_45 : i32 to vector<8x1xi32>
    %304 = arith.cmpi eq, %173, %303 : vector<8x1xi32>
    %305 = vector.shape_cast %304 : vector<8x1xi1> to vector<8x1xi1>
    %306 = vector.broadcast %305 : vector<8x1xi1> to vector<8x256xi1>
    %307 = vector.shape_cast %302 : vector<1x256xf32> to vector<1x256xf32>
    %308 = vector.broadcast %307 : vector<1x256xf32> to vector<8x256xf32>
    %309 = arith.select %306, %308, %292 : vector<8x256xi1>, vector<8x256xf32>
    %c0_i32_46 = arith.constant 0 : i32
    %310 = arith.cmpi eq, %arg0, %c0_i32_46 : i32
    %311 = arith.extui %310 : i1 to i32
    %c0_i32_47 = arith.constant 0 : i32
    %312 = arith.cmpi ne, %311, %c0_i32_47 : i32
    scf.if %312 {
      %c0_52 = arith.constant 0 : index
      %c0_53 = arith.constant 0 : index
      %319 = vector.load %arg3[%c0_52, %c0_53] : memref<8x256xf32, #tpu.memory_space<vmem>>, vector<8x256xf32>
      tpu.vector_store %arg3[%c0_52, %c0_53], %309 {strides = array<i32>} : memref<8x256xf32, #tpu.memory_space<vmem>>, vector<8x256xf32>,
    } else {
    }
    %c0_i32_48 = arith.constant 0 : i32
    %313 = arith.cmpi sgt, %arg0, %c0_i32_48 : i32
    %314 = arith.extui %313 : i1 to i32
    %c0_i32_49 = arith.constant 0 : i32
    %315 = arith.cmpi ne, %314, %c0_i32_49 : i32
    scf.if %315 {
      %c1_i32_52 = arith.constant 1 : i32
      %319 = arith.subi %arg0, %c1_i32_52 : i32
      %320 = arith.index_cast %319 : i32 to index
      %321 = memref.load %arg1[%320] : memref<4xf32, #tpu.memory_space<smem>>
      %c0_53 = arith.constant 0 : index
      %c0_54 = arith.constant 0 : index
      %322 = vector.load %arg3[%c0_53, %c0_54] : memref<8x256xf32, #tpu.memory_space<vmem>>, vector<8x256xf32>
      %cst_55 = arith.constant dense<0.000000e+00> : vector<8x8xf32>
      %323 = tpu.matmul %322, %309, %cst_55 {dimension_numbers = #tpu.dot_dimension_numbers<[1], [1], [0], [0], [0, 0, 1, 0], [], []>} : vector<8x256xf32>, vector<8x256xf32>, vector<8x8xf32> -> vector<8x8xf32>
      %cst_56 = arith.constant dense<0.000000e+00> : vector<8x256xf32>
      %324 = tpu.matmul %323, %309, %cst_56 {dimension_numbers = #tpu.dot_dimension_numbers<[1], [0], [0], [1], [0, 0, 1, 1], [], []>} : vector<8x8xf32>, vector<8x256xf32>, vector<8x256xf32> -> vector<8x256xf32>
      %cst_57 = arith.constant 1.000000e+00 : f32
      %325 = arith.subf %cst_57, %321 : f32
      %326 = vector.broadcast %325 : f32 to vector<8x256xf32>
      %327 = arith.mulf %326, %322 : vector<8x256xf32>
      %328 = vector.broadcast %321 : f32 to vector<8x256xf32>
      %329 = arith.mulf %328, %324 : vector<8x256xf32>
      %330 = arith.addf %327, %329 : vector<8x256xf32>
      %c0_58 = arith.constant 0 : index
      %c0_59 = arith.constant 0 : index
      %331 = vector.load %arg3[%c0_58, %c0_59] : memref<8x256xf32, #tpu.memory_space<vmem>>, vector<8x256xf32>
      tpu.vector_store %arg3[%c0_58, %c0_59], %330 {strides = array<i32>} : memref<8x256xf32, #tpu.memory_space<vmem>>, vector<8x256xf32>,
    } else {
    }
    %c3_i32_50 = arith.constant 3 : i32
    %316 = arith.cmpi eq, %arg0, %c3_i32_50 : i32
    %317 = arith.extui %316 : i1 to i32
    %c0_i32_51 = arith.constant 0 : i32
    %318 = arith.cmpi ne, %317, %c0_i32_51 : i32
    scf.if %318 {
      %c0_52 = arith.constant 0 : index
      %c0_53 = arith.constant 0 : index
      %319 = vector.load %arg3[%c0_52, %c0_53] : memref<8x256xf32, #tpu.memory_space<vmem>>, vector<8x256xf32>
      %cst_54 = arith.constant dense<0.000000e+00> : vector<8x8xf32>
      %320 = tpu.matmul %319, %319, %cst_54 {dimension_numbers = #tpu.dot_dimension_numbers<[1], [1], [0], [0], [0, 0, 1, 0], [], []>} : vector<8x256xf32>, vector<8x256xf32>, vector<8x8xf32> -> vector<8x8xf32>
      %321 = tpu.iota {dimensions = array<i32: 0>} : vector<8x8xi32>
      %322 = tpu.iota {dimensions = array<i32: 1>} : vector<8x8xi32>
      %323 = arith.cmpi eq, %321, %322 : vector<8x8xi32>
      %cst_55 = arith.constant 0.00999999977 : f32
      %cst_56 = arith.constant 0.000000e+00 : f32
      %324 = vector.broadcast %cst_55 : f32 to vector<8x8xf32>
      %325 = vector.broadcast %cst_56 : f32 to vector<8x8xf32>
      %326 = arith.select %323, %324, %325 : vector<8x8xi1>, vector<8x8xf32>
      %327 = arith.addf %320, %326 : vector<8x8xf32>
      %328 = tpu.iota {dimensions = array<i32: 1>} : vector<1x8xi32>
      %cst_57 = arith.constant 0.000000e+00 : f32
      %329 = vector.broadcast %cst_57 : f32 to vector<8x8xf32>
      %330 = vector.extract_strided_slice %329 {offsets = [0, 0], sizes = [8, 1], strides = [1, 1]} : vector<8x8xf32> to vector<8x1xf32>
      %331 = vector.broadcast %330 : vector<8x1xf32> to vector<8x8xf32>
      %332 = arith.mulf %331, %329 : vector<8x8xf32>
      %cst_58 = arith.constant dense<0.000000e+00> : vector<8xf32>
      %333 = vector.multi_reduction <add>, %332, %cst_58 [0] : vector<8x8xf32> to vector<8xf32>
      %334 = vector.shape_cast %333 : vector<8xf32> to vector<1x8xf32>
      %335 = vector.extract_strided_slice %327 {offsets = [0, 0], sizes = [1, 8], strides = [1, 1]} : vector<8x8xf32> to vector<1x8xf32>
      %336 = arith.subf %335, %334 : vector<1x8xf32>
      %337 = vector.extract_strided_slice %336 {offsets = [0, 0], sizes = [1, 1], strides = [1, 1]} : vector<1x8xf32> to vector<1x1xf32>
      %338 = math.rsqrt %337 : vector<1x1xf32>
      %339 = vector.broadcast %338 : vector<1x1xf32> to vector<1x8xf32>
      %340 = arith.mulf %336, %339 : vector<1x8xf32>
      %c0_i32_59 = arith.constant 0 : i32
      %341 = vector.broadcast %c0_i32_59 : i32 to vector<1x8xi32>
      %342 = arith.cmpi sge, %328, %341 : vector<1x8xi32>
      %cst_60 = arith.constant 0.000000e+00 : f32
      %343 = vector.broadcast %cst_60 : f32 to vector<1x8xf32>
      %344 = arith.select %342, %340, %343 : vector<1x8xi1>, vector<1x8xf32>
      %c0_i32_61 = arith.constant 0 : i32
      %345 = vector.broadcast %c0_i32_61 : i32 to vector<8x8xi32>
      %346 = arith.cmpi eq, %321, %345 : vector<8x8xi32>
      %347 = vector.shape_cast %344 : vector<1x8xf32> to vector<1x8xf32>
      %348 = vector.broadcast %347 : vector<1x8xf32> to vector<8x8xf32>
      %349 = arith.select %346, %348, %329 : vector<8x8xi1>, vector<8x8xf32>
      %350 = vector.extract_strided_slice %349 {offsets = [0, 1], sizes = [8, 1], strides = [1, 1]} : vector<8x8xf32> to vector<8x1xf32>
      %351 = vector.broadcast %350 : vector<8x1xf32> to vector<8x8xf32>
      %352 = arith.mulf %351, %349 : vector<8x8xf32>
      %cst_62 = arith.constant dense<0.000000e+00> : vector<8xf32>
      %353 = vector.multi_reduction <add>, %352, %cst_62 [0] : vector<8x8xf32> to vector<8xf32>
      %354 = vector.shape_cast %353 : vector<8xf32> to vector<1x8xf32>
      %355 = vector.extract_strided_slice %327 {offsets = [1, 0], sizes = [1, 8], strides = [1, 1]} : vector<8x8xf32> to vector<1x8xf32>
      %356 = arith.subf %355, %354 : vector<1x8xf32>
      %357 = vector.extract_strided_slice %356 {offsets = [0, 1], sizes = [1, 1], strides = [1, 1]} : vector<1x8xf32> to vector<1x1xf32>
      %358 = math.rsqrt %357 : vector<1x1xf32>
      %359 = vector.broadcast %358 : vector<1x1xf32> to vector<1x8xf32>
      %360 = arith.mulf %356, %359 : vector<1x8xf32>
      %c1_i32_63 = arith.constant 1 : i32
      %361 = vector.broadcast %c1_i32_63 : i32 to vector<1x8xi32>
      %362 = arith.cmpi sge, %328, %361 : vector<1x8xi32>
      %cst_64 = arith.constant 0.000000e+00 : f32
      %363 = vector.broadcast %cst_64 : f32 to vector<1x8xf32>
      %364 = arith.select %362, %360, %363 : vector<1x8xi1>, vector<1x8xf32>
      %c1_i32_65 = arith.constant 1 : i32
      %365 = vector.broadcast %c1_i32_65 : i32 to vector<8x8xi32>
      %366 = arith.cmpi eq, %321, %365 : vector<8x8xi32>
      %367 = vector.shape_cast %364 : vector<1x8xf32> to vector<1x8xf32>
      %368 = vector.broadcast %367 : vector<1x8xf32> to vector<8x8xf32>
      %369 = arith.select %366, %368, %349 : vector<8x8xi1>, vector<8x8xf32>
      %370 = vector.extract_strided_slice %369 {offsets = [0, 2], sizes = [8, 1], strides = [1, 1]} : vector<8x8xf32> to vector<8x1xf32>
      %371 = vector.broadcast %370 : vector<8x1xf32> to vector<8x8xf32>
      %372 = arith.mulf %371, %369 : vector<8x8xf32>
      %cst_66 = arith.constant dense<0.000000e+00> : vector<8xf32>
      %373 = vector.multi_reduction <add>, %372, %cst_66 [0] : vector<8x8xf32> to vector<8xf32>
      %374 = vector.shape_cast %373 : vector<8xf32> to vector<1x8xf32>
      %375 = vector.extract_strided_slice %327 {offsets = [2, 0], sizes = [1, 8], strides = [1, 1]} : vector<8x8xf32> to vector<1x8xf32>
      %376 = arith.subf %375, %374 : vector<1x8xf32>
      %377 = vector.extract_strided_slice %376 {offsets = [0, 2], sizes = [1, 1], strides = [1, 1]} : vector<1x8xf32> to vector<1x1xf32>
      %378 = math.rsqrt %377 : vector<1x1xf32>
      %379 = vector.broadcast %378 : vector<1x1xf32> to vector<1x8xf32>
      %380 = arith.mulf %376, %379 : vector<1x8xf32>
      %c2_i32_67 = arith.constant 2 : i32
      %381 = vector.broadcast %c2_i32_67 : i32 to vector<1x8xi32>
      %382 = arith.cmpi sge, %328, %381 : vector<1x8xi32>
      %cst_68 = arith.constant 0.000000e+00 : f32
      %383 = vector.broadcast %cst_68 : f32 to vector<1x8xf32>
      %384 = arith.select %382, %380, %383 : vector<1x8xi1>, vector<1x8xf32>
      %c2_i32_69 = arith.constant 2 : i32
      %385 = vector.broadcast %c2_i32_69 : i32 to vector<8x8xi32>
      %386 = arith.cmpi eq, %321, %385 : vector<8x8xi32>
      %387 = vector.shape_cast %384 : vector<1x8xf32> to vector<1x8xf32>
      %388 = vector.broadcast %387 : vector<1x8xf32> to vector<8x8xf32>
      %389 = arith.select %386, %388, %369 : vector<8x8xi1>, vector<8x8xf32>
      %390 = vector.extract_strided_slice %389 {offsets = [0, 3], sizes = [8, 1], strides = [1, 1]} : vector<8x8xf32> to vector<8x1xf32>
      %391 = vector.broadcast %390 : vector<8x1xf32> to vector<8x8xf32>
      %392 = arith.mulf %391, %389 : vector<8x8xf32>
      %cst_70 = arith.constant dense<0.000000e+00> : vector<8xf32>
      %393 = vector.multi_reduction <add>, %392, %cst_70 [0] : vector<8x8xf32> to vector<8xf32>
      %394 = vector.shape_cast %393 : vector<8xf32> to vector<1x8xf32>
      %395 = vector.extract_strided_slice %327 {offsets = [3, 0], sizes = [1, 8], strides = [1, 1]} : vector<8x8xf32> to vector<1x8xf32>
      %396 = arith.subf %395, %394 : vector<1x8xf32>
      %397 = vector.extract_strided_slice %396 {offsets = [0, 3], sizes = [1, 1], strides = [1, 1]} : vector<1x8xf32> to vector<1x1xf32>
      %398 = math.rsqrt %397 : vector<1x1xf32>
      %399 = vector.broadcast %398 : vector<1x1xf32> to vector<1x8xf32>
      %400 = arith.mulf %396, %399 : vector<1x8xf32>
      %c3_i32_71 = arith.constant 3 : i32
      %401 = vector.broadcast %c3_i32_71 : i32 to vector<1x8xi32>
      %402 = arith.cmpi sge, %328, %401 : vector<1x8xi32>
      %cst_72 = arith.constant 0.000000e+00 : f32
      %403 = vector.broadcast %cst_72 : f32 to vector<1x8xf32>
      %404 = arith.select %402, %400, %403 : vector<1x8xi1>, vector<1x8xf32>
      %c3_i32_73 = arith.constant 3 : i32
      %405 = vector.broadcast %c3_i32_73 : i32 to vector<8x8xi32>
      %406 = arith.cmpi eq, %321, %405 : vector<8x8xi32>
      %407 = vector.shape_cast %404 : vector<1x8xf32> to vector<1x8xf32>
      %408 = vector.broadcast %407 : vector<1x8xf32> to vector<8x8xf32>
      %409 = arith.select %406, %408, %389 : vector<8x8xi1>, vector<8x8xf32>
      %410 = vector.extract_strided_slice %409 {offsets = [0, 4], sizes = [8, 1], strides = [1, 1]} : vector<8x8xf32> to vector<8x1xf32>
      %411 = vector.broadcast %410 : vector<8x1xf32> to vector<8x8xf32>
      %412 = arith.mulf %411, %409 : vector<8x8xf32>
      %cst_74 = arith.constant dense<0.000000e+00> : vector<8xf32>
      %413 = vector.multi_reduction <add>, %412, %cst_74 [0] : vector<8x8xf32> to vector<8xf32>
      %414 = vector.shape_cast %413 : vector<8xf32> to vector<1x8xf32>
      %415 = vector.extract_strided_slice %327 {offsets = [4, 0], sizes = [1, 8], strides = [1, 1]} : vector<8x8xf32> to vector<1x8xf32>
      %416 = arith.subf %415, %414 : vector<1x8xf32>
      %417 = vector.extract_strided_slice %416 {offsets = [0, 4], sizes = [1, 1], strides = [1, 1]} : vector<1x8xf32> to vector<1x1xf32>
      %418 = math.rsqrt %417 : vector<1x1xf32>
      %419 = vector.broadcast %418 : vector<1x1xf32> to vector<1x8xf32>
      %420 = arith.mulf %416, %419 : vector<1x8xf32>
      %c4_i32_75 = arith.constant 4 : i32
      %421 = vector.broadcast %c4_i32_75 : i32 to vector<1x8xi32>
      %422 = arith.cmpi sge, %328, %421 : vector<1x8xi32>
      %cst_76 = arith.constant 0.000000e+00 : f32
      %423 = vector.broadcast %cst_76 : f32 to vector<1x8xf32>
      %424 = arith.select %422, %420, %423 : vector<1x8xi1>, vector<1x8xf32>
      %c4_i32_77 = arith.constant 4 : i32
      %425 = vector.broadcast %c4_i32_77 : i32 to vector<8x8xi32>
      %426 = arith.cmpi eq, %321, %425 : vector<8x8xi32>
      %427 = vector.shape_cast %424 : vector<1x8xf32> to vector<1x8xf32>
      %428 = vector.broadcast %427 : vector<1x8xf32> to vector<8x8xf32>
      %429 = arith.select %426, %428, %409 : vector<8x8xi1>, vector<8x8xf32>
      %430 = vector.extract_strided_slice %429 {offsets = [0, 5], sizes = [8, 1], strides = [1, 1]} : vector<8x8xf32> to vector<8x1xf32>
      %431 = vector.broadcast %430 : vector<8x1xf32> to vector<8x8xf32>
      %432 = arith.mulf %431, %429 : vector<8x8xf32>
      %cst_78 = arith.constant dense<0.000000e+00> : vector<8xf32>
      %433 = vector.multi_reduction <add>, %432, %cst_78 [0] : vector<8x8xf32> to vector<8xf32>
      %434 = vector.shape_cast %433 : vector<8xf32> to vector<1x8xf32>
      %435 = vector.extract_strided_slice %327 {offsets = [5, 0], sizes = [1, 8], strides = [1, 1]} : vector<8x8xf32> to vector<1x8xf32>
      %436 = arith.subf %435, %434 : vector<1x8xf32>
      %437 = vector.extract_strided_slice %436 {offsets = [0, 5], sizes = [1, 1], strides = [1, 1]} : vector<1x8xf32> to vector<1x1xf32>
      %438 = math.rsqrt %437 : vector<1x1xf32>
      %439 = vector.broadcast %438 : vector<1x1xf32> to vector<1x8xf32>
      %440 = arith.mulf %436, %439 : vector<1x8xf32>
      %c5_i32_79 = arith.constant 5 : i32
      %441 = vector.broadcast %c5_i32_79 : i32 to vector<1x8xi32>
      %442 = arith.cmpi sge, %328, %441 : vector<1x8xi32>
      %cst_80 = arith.constant 0.000000e+00 : f32
      %443 = vector.broadcast %cst_80 : f32 to vector<1x8xf32>
      %444 = arith.select %442, %440, %443 : vector<1x8xi1>, vector<1x8xf32>
      %c5_i32_81 = arith.constant 5 : i32
      %445 = vector.broadcast %c5_i32_81 : i32 to vector<8x8xi32>
      %446 = arith.cmpi eq, %321, %445 : vector<8x8xi32>
      %447 = vector.shape_cast %444 : vector<1x8xf32> to vector<1x8xf32>
      %448 = vector.broadcast %447 : vector<1x8xf32> to vector<8x8xf32>
      %449 = arith.select %446, %448, %429 : vector<8x8xi1>, vector<8x8xf32>
      %450 = vector.extract_strided_slice %449 {offsets = [0, 6], sizes = [8, 1], strides = [1, 1]} : vector<8x8xf32> to vector<8x1xf32>
      %451 = vector.broadcast %450 : vector<8x1xf32> to vector<8x8xf32>
      %452 = arith.mulf %451, %449 : vector<8x8xf32>
      %cst_82 = arith.constant dense<0.000000e+00> : vector<8xf32>
      %453 = vector.multi_reduction <add>, %452, %cst_82 [0] : vector<8x8xf32> to vector<8xf32>
      %454 = vector.shape_cast %453 : vector<8xf32> to vector<1x8xf32>
      %455 = vector.extract_strided_slice %327 {offsets = [6, 0], sizes = [1, 8], strides = [1, 1]} : vector<8x8xf32> to vector<1x8xf32>
      %456 = arith.subf %455, %454 : vector<1x8xf32>
      %457 = vector.extract_strided_slice %456 {offsets = [0, 6], sizes = [1, 1], strides = [1, 1]} : vector<1x8xf32> to vector<1x1xf32>
      %458 = math.rsqrt %457 : vector<1x1xf32>
      %459 = vector.broadcast %458 : vector<1x1xf32> to vector<1x8xf32>
      %460 = arith.mulf %456, %459 : vector<1x8xf32>
      %c6_i32_83 = arith.constant 6 : i32
      %461 = vector.broadcast %c6_i32_83 : i32 to vector<1x8xi32>
      %462 = arith.cmpi sge, %328, %461 : vector<1x8xi32>
      %cst_84 = arith.constant 0.000000e+00 : f32
      %463 = vector.broadcast %cst_84 : f32 to vector<1x8xf32>
      %464 = arith.select %462, %460, %463 : vector<1x8xi1>, vector<1x8xf32>
      %c6_i32_85 = arith.constant 6 : i32
      %465 = vector.broadcast %c6_i32_85 : i32 to vector<8x8xi32>
      %466 = arith.cmpi eq, %321, %465 : vector<8x8xi32>
      %467 = vector.shape_cast %464 : vector<1x8xf32> to vector<1x8xf32>
      %468 = vector.broadcast %467 : vector<1x8xf32> to vector<8x8xf32>
      %469 = arith.select %466, %468, %449 : vector<8x8xi1>, vector<8x8xf32>
      %470 = vector.extract_strided_slice %469 {offsets = [0, 7], sizes = [8, 1], strides = [1, 1]} : vector<8x8xf32> to vector<8x1xf32>
      %471 = vector.broadcast %470 : vector<8x1xf32> to vector<8x8xf32>
      %472 = arith.mulf %471, %469 : vector<8x8xf32>
      %cst_86 = arith.constant dense<0.000000e+00> : vector<8xf32>
      %473 = vector.multi_reduction <add>, %472, %cst_86 [0] : vector<8x8xf32> to vector<8xf32>
      %474 = vector.shape_cast %473 : vector<8xf32> to vector<1x8xf32>
      %475 = vector.extract_strided_slice %327 {offsets = [7, 0], sizes = [1, 8], strides = [1, 1]} : vector<8x8xf32> to vector<1x8xf32>
      %476 = arith.subf %475, %474 : vector<1x8xf32>
      %477 = vector.extract_strided_slice %476 {offsets = [0, 7], sizes = [1, 1], strides = [1, 1]} : vector<1x8xf32> to vector<1x1xf32>
      %478 = math.rsqrt %477 : vector<1x1xf32>
      %479 = vector.broadcast %478 : vector<1x1xf32> to vector<1x8xf32>
      %480 = arith.mulf %476, %479 : vector<1x8xf32>
      %c7_i32_87 = arith.constant 7 : i32
      %481 = vector.broadcast %c7_i32_87 : i32 to vector<1x8xi32>
      %482 = arith.cmpi sge, %328, %481 : vector<1x8xi32>
      %cst_88 = arith.constant 0.000000e+00 : f32
      %483 = vector.broadcast %cst_88 : f32 to vector<1x8xf32>
      %484 = arith.select %482, %480, %483 : vector<1x8xi1>, vector<1x8xf32>
      %c7_i32_89 = arith.constant 7 : i32
      %485 = vector.broadcast %c7_i32_89 : i32 to vector<8x8xi32>
      %486 = arith.cmpi eq, %321, %485 : vector<8x8xi32>
      %487 = vector.shape_cast %484 : vector<1x8xf32> to vector<1x8xf32>
      %488 = vector.broadcast %487 : vector<1x8xf32> to vector<8x8xf32>
      %489 = arith.select %486, %488, %469 : vector<8x8xi1>, vector<8x8xf32>
      %cst_90 = arith.constant 0.000000e+00 : f32
      %490 = vector.broadcast %cst_90 : f32 to vector<8x256xf32>
      %491 = tpu.iota {dimensions = array<i32: 0>} : vector<8x1xi32>
      %492 = vector.extract_strided_slice %489 {offsets = [0, 0], sizes = [8, 1], strides = [1, 1]} : vector<8x8xf32> to vector<8x1xf32>
      %493 = vector.broadcast %492 : vector<8x1xf32> to vector<8x256xf32>
      %494 = arith.mulf %493, %490 : vector<8x256xf32>
      %cst_91 = arith.constant dense<0.000000e+00> : vector<256xf32>
      %495 = vector.multi_reduction <add>, %494, %cst_91 [0] : vector<8x256xf32> to vector<256xf32>
      %496 = vector.shape_cast %495 : vector<256xf32> to vector<1x256xf32>
      %497 = vector.extract_strided_slice %319 {offsets = [0, 0], sizes = [1, 256], strides = [1, 1]} : vector<8x256xf32> to vector<1x256xf32>
      %498 = arith.subf %497, %496 : vector<1x256xf32>
      %499 = vector.extract_strided_slice %489 {offsets = [0, 0], sizes = [1, 1], strides = [1, 1]} : vector<8x8xf32> to vector<1x1xf32>
      %500 = vector.broadcast %499 : vector<1x1xf32> to vector<1x256xf32>
      %501 = arith.divf %498, %500 : vector<1x256xf32>
      %c0_i32_92 = arith.constant 0 : i32
      %502 = vector.broadcast %c0_i32_92 : i32 to vector<8x1xi32>
      %503 = arith.cmpi eq, %491, %502 : vector<8x1xi32>
      %504 = vector.shape_cast %503 : vector<8x1xi1> to vector<8x1xi1>
      %505 = vector.broadcast %504 : vector<8x1xi1> to vector<8x256xi1>
      %506 = vector.shape_cast %501 : vector<1x256xf32> to vector<1x256xf32>
      %507 = vector.broadcast %506 : vector<1x256xf32> to vector<8x256xf32>
      %508 = arith.select %505, %507, %490 : vector<8x256xi1>, vector<8x256xf32>
      %509 = vector.extract_strided_slice %489 {offsets = [0, 1], sizes = [8, 1], strides = [1, 1]} : vector<8x8xf32> to vector<8x1xf32>
      %510 = vector.broadcast %509 : vector<8x1xf32> to vector<8x256xf32>
      %511 = arith.mulf %510, %508 : vector<8x256xf32>
      %cst_93 = arith.constant dense<0.000000e+00> : vector<256xf32>
      %512 = vector.multi_reduction <add>, %511, %cst_93 [0] : vector<8x256xf32> to vector<256xf32>
      %513 = vector.shape_cast %512 : vector<256xf32> to vector<1x256xf32>
      %514 = vector.extract_strided_slice %319 {offsets = [1, 0], sizes = [1, 256], strides = [1, 1]} : vector<8x256xf32> to vector<1x256xf32>
      %515 = arith.subf %514, %513 : vector<1x256xf32>
      %516 = vector.extract_strided_slice %489 {offsets = [1, 1], sizes = [1, 1], strides = [1, 1]} : vector<8x8xf32> to vector<1x1xf32>
      %517 = vector.broadcast %516 : vector<1x1xf32> to vector<1x256xf32>
      %518 = arith.divf %515, %517 : vector<1x256xf32>
      %c1_i32_94 = arith.constant 1 : i32
      %519 = vector.broadcast %c1_i32_94 : i32 to vector<8x1xi32>
      %520 = arith.cmpi eq, %491, %519 : vector<8x1xi32>
      %521 = vector.shape_cast %520 : vector<8x1xi1> to vector<8x1xi1>
      %522 = vector.broadcast %521 : vector<8x1xi1> to vector<8x256xi1>
      %523 = vector.shape_cast %518 : vector<1x256xf32> to vector<1x256xf32>
      %524 = vector.broadcast %523 : vector<1x256xf32> to vector<8x256xf32>
      %525 = arith.select %522, %524, %508 : vector<8x256xi1>, vector<8x256xf32>
      %526 = vector.extract_strided_slice %489 {offsets = [0, 2], sizes = [8, 1], strides = [1, 1]} : vector<8x8xf32> to vector<8x1xf32>
      %527 = vector.broadcast %526 : vector<8x1xf32> to vector<8x256xf32>
      %528 = arith.mulf %527, %525 : vector<8x256xf32>
      %cst_95 = arith.constant dense<0.000000e+00> : vector<256xf32>
      %529 = vector.multi_reduction <add>, %528, %cst_95 [0] : vector<8x256xf32> to vector<256xf32>
      %530 = vector.shape_cast %529 : vector<256xf32> to vector<1x256xf32>
      %531 = vector.extract_strided_slice %319 {offsets = [2, 0], sizes = [1, 256], strides = [1, 1]} : vector<8x256xf32> to vector<1x256xf32>
      %532 = arith.subf %531, %530 : vector<1x256xf32>
      %533 = vector.extract_strided_slice %489 {offsets = [2, 2], sizes = [1, 1], strides = [1, 1]} : vector<8x8xf32> to vector<1x1xf32>
      %534 = vector.broadcast %533 : vector<1x1xf32> to vector<1x256xf32>
      %535 = arith.divf %532, %534 : vector<1x256xf32>
      %c2_i32_96 = arith.constant 2 : i32
      %536 = vector.broadcast %c2_i32_96 : i32 to vector<8x1xi32>
      %537 = arith.cmpi eq, %491, %536 : vector<8x1xi32>
      %538 = vector.shape_cast %537 : vector<8x1xi1> to vector<8x1xi1>
      %539 = vector.broadcast %538 : vector<8x1xi1> to vector<8x256xi1>
      %540 = vector.shape_cast %535 : vector<1x256xf32> to vector<1x256xf32>
      %541 = vector.broadcast %540 : vector<1x256xf32> to vector<8x256xf32>
      %542 = arith.select %539, %541, %525 : vector<8x256xi1>, vector<8x256xf32>
      %543 = vector.extract_strided_slice %489 {offsets = [0, 3], sizes = [8, 1], strides = [1, 1]} : vector<8x8xf32> to vector<8x1xf32>
      %544 = vector.broadcast %543 : vector<8x1xf32> to vector<8x256xf32>
      %545 = arith.mulf %544, %542 : vector<8x256xf32>
      %cst_97 = arith.constant dense<0.000000e+00> : vector<256xf32>
      %546 = vector.multi_reduction <add>, %545, %cst_97 [0] : vector<8x256xf32> to vector<256xf32>
      %547 = vector.shape_cast %546 : vector<256xf32> to vector<1x256xf32>
      %548 = vector.extract_strided_slice %319 {offsets = [3, 0], sizes = [1, 256], strides = [1, 1]} : vector<8x256xf32> to vector<1x256xf32>
      %549 = arith.subf %548, %547 : vector<1x256xf32>
      %550 = vector.extract_strided_slice %489 {offsets = [3, 3], sizes = [1, 1], strides = [1, 1]} : vector<8x8xf32> to vector<1x1xf32>
      %551 = vector.broadcast %550 : vector<1x1xf32> to vector<1x256xf32>
      %552 = arith.divf %549, %551 : vector<1x256xf32>
      %c3_i32_98 = arith.constant 3 : i32
      %553 = vector.broadcast %c3_i32_98 : i32 to vector<8x1xi32>
      %554 = arith.cmpi eq, %491, %553 : vector<8x1xi32>
      %555 = vector.shape_cast %554 : vector<8x1xi1> to vector<8x1xi1>
      %556 = vector.broadcast %555 : vector<8x1xi1> to vector<8x256xi1>
      %557 = vector.shape_cast %552 : vector<1x256xf32> to vector<1x256xf32>
      %558 = vector.broadcast %557 : vector<1x256xf32> to vector<8x256xf32>
      %559 = arith.select %556, %558, %542 : vector<8x256xi1>, vector<8x256xf32>
      %560 = vector.extract_strided_slice %489 {offsets = [0, 4], sizes = [8, 1], strides = [1, 1]} : vector<8x8xf32> to vector<8x1xf32>
      %561 = vector.broadcast %560 : vector<8x1xf32> to vector<8x256xf32>
      %562 = arith.mulf %561, %559 : vector<8x256xf32>
      %cst_99 = arith.constant dense<0.000000e+00> : vector<256xf32>
      %563 = vector.multi_reduction <add>, %562, %cst_99 [0] : vector<8x256xf32> to vector<256xf32>
      %564 = vector.shape_cast %563 : vector<256xf32> to vector<1x256xf32>
      %565 = vector.extract_strided_slice %319 {offsets = [4, 0], sizes = [1, 256], strides = [1, 1]} : vector<8x256xf32> to vector<1x256xf32>
      %566 = arith.subf %565, %564 : vector<1x256xf32>
      %567 = vector.extract_strided_slice %489 {offsets = [4, 4], sizes = [1, 1], strides = [1, 1]} : vector<8x8xf32> to vector<1x1xf32>
      %568 = vector.broadcast %567 : vector<1x1xf32> to vector<1x256xf32>
      %569 = arith.divf %566, %568 : vector<1x256xf32>
      %c4_i32_100 = arith.constant 4 : i32
      %570 = vector.broadcast %c4_i32_100 : i32 to vector<8x1xi32>
      %571 = arith.cmpi eq, %491, %570 : vector<8x1xi32>
      %572 = vector.shape_cast %571 : vector<8x1xi1> to vector<8x1xi1>
      %573 = vector.broadcast %572 : vector<8x1xi1> to vector<8x256xi1>
      %574 = vector.shape_cast %569 : vector<1x256xf32> to vector<1x256xf32>
      %575 = vector.broadcast %574 : vector<1x256xf32> to vector<8x256xf32>
      %576 = arith.select %573, %575, %559 : vector<8x256xi1>, vector<8x256xf32>
      %577 = vector.extract_strided_slice %489 {offsets = [0, 5], sizes = [8, 1], strides = [1, 1]} : vector<8x8xf32> to vector<8x1xf32>
      %578 = vector.broadcast %577 : vector<8x1xf32> to vector<8x256xf32>
      %579 = arith.mulf %578, %576 : vector<8x256xf32>
      %cst_101 = arith.constant dense<0.000000e+00> : vector<256xf32>
      %580 = vector.multi_reduction <add>, %579, %cst_101 [0] : vector<8x256xf32> to vector<256xf32>
      %581 = vector.shape_cast %580 : vector<256xf32> to vector<1x256xf32>
      %582 = vector.extract_strided_slice %319 {offsets = [5, 0], sizes = [1, 256], strides = [1, 1]} : vector<8x256xf32> to vector<1x256xf32>
      %583 = arith.subf %582, %581 : vector<1x256xf32>
      %584 = vector.extract_strided_slice %489 {offsets = [5, 5], sizes = [1, 1], strides = [1, 1]} : vector<8x8xf32> to vector<1x1xf32>
      %585 = vector.broadcast %584 : vector<1x1xf32> to vector<1x256xf32>
      %586 = arith.divf %583, %585 : vector<1x256xf32>
      %c5_i32_102 = arith.constant 5 : i32
      %587 = vector.broadcast %c5_i32_102 : i32 to vector<8x1xi32>
      %588 = arith.cmpi eq, %491, %587 : vector<8x1xi32>
      %589 = vector.shape_cast %588 : vector<8x1xi1> to vector<8x1xi1>
      %590 = vector.broadcast %589 : vector<8x1xi1> to vector<8x256xi1>
      %591 = vector.shape_cast %586 : vector<1x256xf32> to vector<1x256xf32>
      %592 = vector.broadcast %591 : vector<1x256xf32> to vector<8x256xf32>
      %593 = arith.select %590, %592, %576 : vector<8x256xi1>, vector<8x256xf32>
      %594 = vector.extract_strided_slice %489 {offsets = [0, 6], sizes = [8, 1], strides = [1, 1]} : vector<8x8xf32> to vector<8x1xf32>
      %595 = vector.broadcast %594 : vector<8x1xf32> to vector<8x256xf32>
      %596 = arith.mulf %595, %593 : vector<8x256xf32>
      %cst_103 = arith.constant dense<0.000000e+00> : vector<256xf32>
      %597 = vector.multi_reduction <add>, %596, %cst_103 [0] : vector<8x256xf32> to vector<256xf32>
      %598 = vector.shape_cast %597 : vector<256xf32> to vector<1x256xf32>
      %599 = vector.extract_strided_slice %319 {offsets = [6, 0], sizes = [1, 256], strides = [1, 1]} : vector<8x256xf32> to vector<1x256xf32>
      %600 = arith.subf %599, %598 : vector<1x256xf32>
      %601 = vector.extract_strided_slice %489 {offsets = [6, 6], sizes = [1, 1], strides = [1, 1]} : vector<8x8xf32> to vector<1x1xf32>
      %602 = vector.broadcast %601 : vector<1x1xf32> to vector<1x256xf32>
      %603 = arith.divf %600, %602 : vector<1x256xf32>
      %c6_i32_104 = arith.constant 6 : i32
      %604 = vector.broadcast %c6_i32_104 : i32 to vector<8x1xi32>
      %605 = arith.cmpi eq, %491, %604 : vector<8x1xi32>
      %606 = vector.shape_cast %605 : vector<8x1xi1> to vector<8x1xi1>
      %607 = vector.broadcast %606 : vector<8x1xi1> to vector<8x256xi1>
      %608 = vector.shape_cast %603 : vector<1x256xf32> to vector<1x256xf32>
      %609 = vector.broadcast %608 : vector<1x256xf32> to vector<8x256xf32>
      %610 = arith.select %607, %609, %593 : vector<8x256xi1>, vector<8x256xf32>
      %611 = vector.extract_strided_slice %489 {offsets = [0, 7], sizes = [8, 1], strides = [1, 1]} : vector<8x8xf32> to vector<8x1xf32>
      %612 = vector.broadcast %611 : vector<8x1xf32> to vector<8x256xf32>
      %613 = arith.mulf %612, %610 : vector<8x256xf32>
      %cst_105 = arith.constant dense<0.000000e+00> : vector<256xf32>
      %614 = vector.multi_reduction <add>, %613, %cst_105 [0] : vector<8x256xf32> to vector<256xf32>
      %615 = vector.shape_cast %614 : vector<256xf32> to vector<1x256xf32>
      %616 = vector.extract_strided_slice %319 {offsets = [7, 0], sizes = [1, 256], strides = [1, 1]} : vector<8x256xf32> to vector<1x256xf32>
      %617 = arith.subf %616, %615 : vector<1x256xf32>
      %618 = vector.extract_strided_slice %489 {offsets = [7, 7], sizes = [1, 1], strides = [1, 1]} : vector<8x8xf32> to vector<1x1xf32>
      %619 = vector.broadcast %618 : vector<1x1xf32> to vector<1x256xf32>
      %620 = arith.divf %617, %619 : vector<1x256xf32>
      %c7_i32_106 = arith.constant 7 : i32
      %621 = vector.broadcast %c7_i32_106 : i32 to vector<8x1xi32>
      %622 = arith.cmpi eq, %491, %621 : vector<8x1xi32>
      %623 = vector.shape_cast %622 : vector<8x1xi1> to vector<8x1xi1>
      %624 = vector.broadcast %623 : vector<8x1xi1> to vector<8x256xi1>
      %625 = vector.shape_cast %620 : vector<1x256xf32> to vector<1x256xf32>
      %626 = vector.broadcast %625 : vector<1x256xf32> to vector<8x256xf32>
      %627 = arith.select %624, %626, %610 : vector<8x256xi1>, vector<8x256xf32>
      %c0_107 = arith.constant 0 : index
      %c0_108 = arith.constant 0 : index
      %628 = vector.load %arg3[%c0_107, %c0_108] : memref<8x256xf32, #tpu.memory_space<vmem>>, vector<8x256xf32>
      tpu.vector_store %arg3[%c0_107, %c0_108], %627 {strides = array<i32>} : memref<8x256xf32, #tpu.memory_space<vmem>>, vector<8x256xf32>,
    } else {
    }
    return
  }
  func.func @transform_0(%arg0: i32) -> i32 {
    %c0_i32 = arith.constant 0 : i32
    %c0_i32_0 = arith.constant 0 : i32
    return %c0_i32 : i32
  }
  func.func @transform_1(%arg0: i32) -> (i32, i32, i32) {
    %c0_i32 = arith.constant 0 : i32
    %c0_i32_0 = arith.constant 0 : i32
    %c0_i32_1 = arith.constant 0 : i32
    return %arg0, %c0_i32, %c0_i32_0 : i32, i32, i32
  }
  func.func @transform_2(%arg0: i32) -> (i32, i32) {
    %c0_i32 = arith.constant 0 : i32
    %c0_i32_0 = arith.constant 0 : i32
    %c0_i32_1 = arith.constant 0 : i32
    return %c0_i32, %c0_i32_0 : i32, i32
  }
}

</mosaic_0001>

<bundles_post_ra>
// kernel: tpu_custom_call.1
= control target key start
LH: loop header
LB: loop body
LE: loop exit
PB: predicated region body
PF: predicated region fallthrough
CT: control target
= control target key end

     0   :  { %7 = vsyncpa [#allocation5], 0  ;;  %s2376_s0 = inlined_call_operand.hbm [shape: f32[4], index: 0, kind: input, shape index: {}]   ;;  %s2377_s1 = inlined_call_operand.hbm [shape: f32[4,8,256], index: 1, kind: input, shape index: {}]   ;;  %s2378_s2 = inlined_call_operand.hbm [shape: f32[8,256], index: 2, kind: output, shape index: {}]  }
   0x1   :  { %8 = vsyncpa [#allocation3], 0 }
   0x2   :  { %10 = vsyncpa [#allocation3 + $0x1], 0 }
   0x3   :  { %11 = vsyncpa [#allocation4], 0  ;;  %s1861_s9 = smov 0   ;;  %s1863_s10 = smov 0  }
   0x4   :  { %s1865_s11 = smov 0   ;;  %s1867_s12 = smov 0  }
   0x5 LB: > { %s1880_s13 = sadd.s32 4294967295, %s1823_s12   ;;  %p58_p0 = scmp.ne.s32.totalorder %s1815_s10, %s1811_s9  ;;  %s1823_s12 = sphi %s1867_s12, %s2393_s12   ;;  %s1819_s11 = sphi %s1865_s11, %s2392_s11   ;;  %s1815_s10 = sphi %s1863_s10, %s2391_s10   ;;  %s1811_s9 = sphi %s1861_s9, %s2390_s9  }
   0x6   : > { %p2379_p1 = scmp.eq.s32.totalorder %s1880_s13, 0  ;;  %p1510_p2 = scmp.ge.s32.totalorder %s1823_s12, 1 }
   0x7   : > { %p90_p3 = scmp.lt.s32.totalorder %s1823_s12, 5  ;;  %s1898_s16 = sadd.s32 1, %s1823_s12  }
   0x8   : > { %p1889_p5 = por %p2379_p1, %p58_p0  ;;  %s42_s17 = ssub.s32 %s1823_s12, %s1898_s16 }
   0x9   : > { %p1893_p6 = pnand %p1510_p2, %p90_p3  ;;  %s45_s18 = sadd.s32 1, %s1819_s11 }
   0xa   : > { %s2381_s14 = scalar_select %p1889_p5, 1, 0 }
   0xb   : > { %p1539_p7 = pneg %p1893_p6  ;;  %p1911_p9 = scmp.eq.s32.totalorder %s42_s17, 0 }
   0xc   : > { %p52_p10 = scmp.ne.s32.totalorder %s1819_s11, %s1815_s10  ;;  %p53_p11 = scmp.eq.s32.totalorder %s1823_s12, 0 }
   0xd   : > { %p1907_p8 = pnand %p1539_p7, %p2379_p1  ;;  %p1548_p12 = scmp.lt.s32.totalorder %s1823_s12, 4 }
   0xe   : > { %s1712_s23 = scalar_lea.hbm %s2376_s0, 16 }
   0xf   : > { %p1713_p13 = scmp.ne.s32.totalorder %s2376_s0, %s1712_s23  ;;  %p1714_p0 = pneg %p1907_p8 }
  0x10   : > { %p1719_p7 = scmp.lt.u32.totalorder %s1712_s23, %s2376_s0 }
  0x11   : > { %p1715_p2 = pnand %p1714_p0, %p1713_p13 }
  0x13   : > { %p1716_p3 = pneg %p1715_p2 }
  0x15   : > { %p1721_p4 = pnand %p1719_p7, %p1716_p3 }
  0x17   : > { %1724 = shalt.err (!%p1721_p4)
}
  0x18   : > { %s1825_s28 = smov [#allocation2]   ;;  %p54_p4 = por %p53_p11, %p52_p10 }
  0x19   : > { %1542 = dma.hbm_to_smem (!%p1907_p8), %s2376_s0, 16, %s1825_s28, [#allocation5]  }
  0x1a   : > { %s1938_s3 = scalar_select %p1911_p9, %s1819_s11, %s45_s18  }
  0x1b   : > { %s112_s4 = sand.u32 1, %s1819_s11   ;;  %s1528_s6 = sshll.u32 %s1823_s12, 8 }
  0x1c   : > { %s1513_s5 = sshll.u32 %s112_s4, 4  ;;  %s1950_s9 = scalar_lea.hbm %s2377_s1, %s1528_s6 }
  0x1d   : > { %s116_s17 = scalar_lea.vmem [#allocation6], %s1513_s5  ;;  %p1956_p8 = pnand %p1548_p12, %p54_p4 }
  0x1e   : > { %s124_s19 = sshll.u32 %s116_s17, 4  ;;  %s113_s20 = scalar_lea.sflag [#allocation3], %s112_s4  ;;  %s1952_s19 = int_to_ptr.vmem [resolvable:$true] %s124_s19 }
  0x1f   : > { %s1725_s21 = scalar_lea.hbm %s1950_s9, 256  ;;  %p1727_p10 = pneg %p1956_p8 }
  0x20   : > { %p1726_p9 = scmp.ne.s32.totalorder %s1950_s9, %s1725_s21  ;;  %s1730_s24 = scalar_lea.hbm %s2377_s1, 1024 }
  0x21   : > { %p1731_p12 = scmp.lt.u32.totalorder %s1950_s9, %s2377_s1  ;;  %p1732_p0 = scmp.lt.u32.totalorder %s1730_s24, %s1725_s21 }
  0x22   : > { %p1728_p11 = pnand %p1727_p10, %p1726_p9  ;;  %p1734_p3 = scmp.lt.u32.totalorder %s1725_s21, %s1950_s9 }
  0x23   : > { %p1733_p2 = por %p1732_p0, %p1731_p12 }
  0x24   : > { %p1729_p13 = pneg %p1728_p11 }
  0x25   : > { %p1735_p7 = por %p1734_p3, %p1733_p2 }
  0x27   : > { %p1736_p4 = pnand %p1735_p7, %p1729_p13 }
  0x29   : > { %1739 = shalt.err (!%p1736_p4)
}
  0x2a   : > { %s1740_s26 = scalar_lea.vmem %s1952_s19, 256  ;;  %s1826_s27 = smov [#allocation6]  }
  0x2b   : > { %p1741_p9 = scmp.ne.s32.totalorder %s1952_s19, %s1740_s26  ;;  %s1745_s28 = sshll.u32 %s1826_s27, 4  ;;  %s1746_s28 = int_to_ptr.vmem [resolvable:$false] %s1745_s28 }
  0x2c   : > { %s1747_s29 = scalar_lea.vmem %s1746_s28, 512  ;;  %p1748_p5 = scmp.lt.s32.totalorder %s1952_s19, %s1746_s28 }
  0x2d   : > { %p1743_p11 = pnand %p1741_p9, %p1727_p10  ;;  %p1749_p12 = scmp.lt.s32.totalorder %s1747_s29, %s1740_s26 }
  0x2f   : > { %p1744_p1 = pneg %p1743_p11  ;;  %p1750_p0 = por %p1749_p12, %p1748_p5 }
  0x31   : > { %p1751_p2 = pnand %p1750_p0, %p1744_p1 }
  0x33   : > { %1754 = shalt.err (!%p1751_p2)
}
  0x34   : > { %1546 = dma.hbm_to_vmem [thread:$0]  (!%p1956_p8), %s1950_s9, 256, %s1952_s19, %s113_s20  }
  0x35   : > { %133 = sbr.rel (%p1893_p6) target bundleno = 5916 (0x171c), region = 28  ;;  %p2386_p10 = scmp.eq.s32.totalorder (!%p1893_p6), %s1880_s13, 0 }
  0x3c   : > { %1798 = dma.done.wait (%p2386_p10), [#allocation5], 16   ;;  %p2387_p13 = pmov %p2386_p10 }
  0x3d   : > { %s139_s30 = sand.u32 1, %s1815_s10   ;;  %p2388_p1 = scmp.ne.s32.totalorder %s2381_s14, 0 }
  0x3e   : > { %1800 = vsyncadd (%p2387_p13), [#allocation5], 4294967280  ;;  %s1518_s4 = sshll.u32 %s139_s30, 4  ;;  %s140_s5 = scalar_lea.sflag [#allocation3], %s139_s30 }
  0x3f   : > { %s143_s6 = scalar_lea.vmem [#allocation6], %s1518_s4 }
  0x40   : > { %1802 = dma.done.wait (%p2388_p1), %s140_s5, 256  }
  0x41   : > { %1804 = vsyncadd (%p2388_p1), %s140_s5, 4294967040 }
  0x42   : > { %148 = sfence }
  0x43   : > { %v1996_v0 = vld [vmem:[%s143_s6 + $0x8] sm:$0xff]  ;;  %v1998_v1 = vld [vmem:[%s143_s6] sm:$0xff]  ;;  %v1827_v2 = vmov 0   ;;  %v162_v3 = vlaneseq  ;;  %v1828_v6 = vmov 0.0   ;;  %v1829_v12 = vmov 1   ;;  %p2389_p5 = scmp.ne.s32.totalorder %s1880_s13, 0 }
  0x44   : > { %168 = vmatprep.subr.mxu0 %v1996_v0  ;;  %232 = vmatprep.mubr.f32.mxu0 %v1996_v0  ;;  %vm260_vm2 = vcmask 64512   ;;  %v1830_v29 = vmov 2   ;;  %v1831_v47 = vmov 3  }
  0x45   : > { %169 = vmatpush1.xpose.msra.mxu0 %v1998_v1  ;;  %1604 = vset.pattern.permute.xlu0 %v1827_v2  ;;  %v2005_v4 = vshrl.u32 %v162_v3, 7  ;;  %v2007_v5 = vand.u32 127, %v162_v3 }
  0x46   : > { %1606 = vset.pattern.permute.xlu1 %v1829_v12 }
  0x47   : > { %vm166_vm0 = vcmp.eq.s32.totalorder %v2005_v4, %v2007_v5  ;;  %v2020_v13 = vsub.s32 0, %v2005_v4  ;;  %vm248_vm1 = vcmp.eq.s32.totalorder %v2005_v4, 0  ;;  %vm276_vm3 = vcmp.ge.s32.totalorder %v2007_v5, 1 }
  0x48   : > { %233 = vmatmul.mubr.f32.vlgmr.msra.gmra.mrb[0].mxu0 %v1998_v1  ;;  %v2011_v7 = vsel %vm166_vm0, 0.01, %v1828_v6  ;;  %v2032_v30 = vsub.s32 1, %v2005_v4  ;;  %vm278_vm4 = vcmp.eq.s32.totalorder %v2005_v4, 1  ;;  %vm305_vm5 = vcmp.ge.s32.totalorder %v2007_v5, 2 }
  0x49   : > { %v2046_v48 = vsub.s32 2, %v2005_v4  ;;  %vm307_vm6 = vcmp.eq.s32.totalorder %v2005_v4, 2  ;;  %v1832_v6 = vmov 4   ;;  %vm334_vm7 = vcmp.ge.s32.totalorder %v2007_v5, 3 }
  0x4a   : > { %vm336_vm8 = vcmp.eq.s32.totalorder %v2005_v4, 3  ;;  %vm363_vm9 = vcmp.ge.s32.totalorder %v2007_v5, 4  ;;  %vm365_vm10 = vcmp.eq.s32.totalorder %v2005_v4, 4  ;;  %vm392_vm11 = vcmp.ge.s32.totalorder %v2007_v5, 5 }
  0x4b   : > { %vm394_vm12 = vcmp.eq.s32.totalorder %v2005_v4, 5  ;;  %vm421_vm13 = vcmp.ge.s32.totalorder %v2007_v5, 6  ;;  %vm423_vm14 = vcmp.eq.s32.totalorder %v2005_v4, 6  ;;  %vm450_vm15 = vcmp.ge.s32.totalorder %v2007_v5, 7 }
  0x4c   : > { %vm452_vm0 = vcmp.eq.s32.totalorder %v2005_v4, 7 }
 0x11b   : > { %v234_v8 = vpop.f32.mrb[0].mxu0 }
 0x11c   : > { %v2014_v9 = vadd.f32 %v234_v8, %v2011_v7  ;;  %v236_v10 = vpop.f32.mrb[1].mxu0  ;;  %v2060_v8 = vsub.s32 3, %v2005_v4 }
 0x11e   : > { %1626 = vrsqrt.f32 %v2014_v9 }
 0x128   : > { %v1627_v11 = vpop.eup %1626 }
 0x129   : > { %242 = vperm.xlu0 %1604, %v1627_v11  }
 0x12d   : > { %1605 = vset.pattern.permute.xlu0 %v1829_v12 }
 0x1a8   : > { %v243_v14 = vpop.permute.xlu0 %242 }
 0x1a9   : > { %v245_v15 = vmul.f32 %v243_v14, %v2014_v9 }
 0x1ab   : > { %v252_v16 = vrot.slane %v245_v15, %v2020_v13 }
 0x1ad   : > { %v253_v17 = vsel %vm248_vm1, %v252_v16, 0.0 }
 0x1ae   : > { %256 = vperm.xlu0 %1605, %v253_v17  }
 0x1b2   : > { %1608 = vset.pattern.permute.xlu0 %v1831_v47 }
 0x22d   : > { %v257_v18 = vpop.permute.xlu0 %256 }
 0x22e   : > { %v259_v19 = vmul.f32 %v257_v18, %v253_v17 }
 0x230   : > { %v261_v20 = vsel %vm260_vm2, %v259_v19, 0.0 }
 0x231   : > { %v262_v21 = vrot.slane %v261_v20, 4 }
 0x233   : > { %v263_v22 = vadd.f32 %v262_v21, %v261_v20 }
 0x235   : > { %v264_v23 = vrot.slane %v263_v22, 2 }
 0x237   : > { %v265_v24 = vadd.f32 %v264_v23, %v263_v22 }
 0x239   : > { %v266_v25 = vrot.slane %v265_v24, 1 }
 0x23b   : > { %v267_v26 = vadd.f32 %v266_v25, %v265_v24 }
 0x23d   : > { %v268_v27 = vsub.f32 %v2014_v9, %v267_v26 }
 0x23f   : > { %1628 = vrsqrt.f32 %v268_v27 }
 0x249   : > { %v1629_v28 = vpop.eup %1628 }
 0x24a   : > { %272 = vperm.xlu1 %1606, %v1629_v28   ;;  %v1833_v28 = vmov 5  }
 0x24e   : > { %1607 = vset.pattern.permute.xlu1 %v1830_v29 }
 0x2c9   : > { %v273_v31 = vpop.permute.xlu1 %272 }
 0x2ca   : > { %v275_v32 = vmul.f32 %v273_v31, %v268_v27  ;;  %v2073_v31 = vsub.s32 4, %v2005_v4 }
 0x2cc   : > { %v277_v33 = vsel %vm276_vm3, %v275_v32, 0.0 }
 0x2cd   : > { %v282_v34 = vrot.slane %v277_v33, %v2032_v30 }
 0x2cf   : > { %v283_v35 = vsel %vm278_vm4, %v282_v34, %v253_v17 }
 0x2d0   : > { %286 = vperm.xlu1 %1607, %v283_v35  }
 0x34f   : > { %v287_v36 = vpop.permute.xlu1 %286 }
 0x350   : > { %v289_v37 = vmul.f32 %v287_v36, %v283_v35 }
 0x352   : > { %v290_v38 = vsel %vm260_vm2, %v289_v37, 0.0 }
 0x353   : > { %v291_v39 = vrot.slane %v290_v38, 4 }
 0x355   : > { %v292_v40 = vadd.f32 %v291_v39, %v290_v38 }
 0x357   : > { %v293_v41 = vrot.slane %v292_v40, 2 }
 0x359   : > { %v294_v42 = vadd.f32 %v293_v41, %v292_v40 }
 0x35b   : > { %v295_v43 = vrot.slane %v294_v42, 1 }
 0x35d   : > { %v296_v44 = vadd.f32 %v295_v43, %v294_v42 }
 0x35f   : > { %v297_v45 = vsub.f32 %v2014_v9, %v296_v44 }
 0x361   : > { %1630 = vrsqrt.f32 %v297_v45 }
 0x36b   : > { %v1631_v46 = vpop.eup %1630 }
 0x36c   : > { %301 = vperm.xlu1 %1607, %v1631_v46  }
 0x370   : > { %1609 = vset.pattern.permute.xlu1 %v1831_v47 }
 0x3eb   : > { %v302_v49 = vpop.permute.xlu1 %301 }
 0x3ec   : > { %v304_v50 = vmul.f32 %v302_v49, %v297_v45 }
 0x3ee   : > { %v306_v51 = vsel %vm305_vm5, %v304_v50, 0.0  ;;  %v1834_v50 = vmov 6  }
 0x3ef   : > { %v311_v52 = vrot.slane %v306_v51, %v2046_v48  ;;  %v2087_v51 = vsub.s32 5, %v2005_v4 }
 0x3f1   : > { %v312_v53 = vsel %vm307_vm6, %v311_v52, %v283_v35 }
 0x3f2   : > { %315 = vperm.xlu0 %1608, %v312_v53  }
 0x3f6   : > { %1611 = vset.pattern.permute.xlu0 %v1832_v6 }
 0x471   : > { %v316_v54 = vpop.permute.xlu0 %315 }
 0x472   : > { %v318_v55 = vmul.f32 %v316_v54, %v312_v53 }
 0x474   : > { %v319_v56 = vsel %vm260_vm2, %v318_v55, 0.0 }
 0x475   : > { %v320_v57 = vrot.slane %v319_v56, 4 }
 0x477   : > { %v321_v58 = vadd.f32 %v320_v57, %v319_v56 }
 0x479   : > { %v322_v59 = vrot.slane %v321_v58, 2 }
 0x47b   : > { %v323_v60 = vadd.f32 %v322_v59, %v321_v58 }
 0x47d   : > { %v324_v61 = vrot.slane %v323_v60, 1 }
 0x47f   : > { %v325_v62 = vadd.f32 %v324_v61, %v323_v60 }
 0x481   : > { %v326_v63 = vsub.f32 %v2014_v9, %v325_v62 }
 0x483   : > { %1632 = vrsqrt.f32 %v326_v63 }
 0x48d   : > { %v1633_v3 = vpop.eup %1632 }
 0x48e   : > { %330 = vperm.xlu1 %1609, %v1633_v3  }
 0x492   : > { %1610 = vset.pattern.permute.xlu1 %v1832_v6 }
 0x50d   : > { %v331_v10 = vpop.permute.xlu1 %330 }
 0x50e   : > { %v333_v11 = vmul.f32 %v331_v10, %v326_v63 }
 0x510   : > { %v335_v14 = vsel %vm334_vm7, %v333_v11, 0.0 }
 0x511   : > { %v340_v15 = vrot.slane %v335_v14, %v2060_v8 }
 0x513   : > { %v341_v16 = vsel %vm336_vm8, %v340_v15, %v312_v53  ;;  %v1835_v15 = vmov 7  }
 0x514   : > { %344 = vperm.xlu1 %1610, %v341_v16  }
 0x518   : > { %1612 = vset.pattern.permute.xlu1 %v1833_v28 }
 0x593   : > { %v345_v17 = vpop.permute.xlu1 %344 }
 0x594   : > { %v347_v18 = vmul.f32 %v345_v17, %v341_v16 }
 0x596   : > { %v348_v19 = vsel %vm260_vm2, %v347_v18, 0.0 }
 0x597   : > { %v349_v20 = vrot.slane %v348_v19, 4 }
 0x599   : > { %v350_v21 = vadd.f32 %v349_v20, %v348_v19 }
 0x59b   : > { %v351_v22 = vrot.slane %v350_v21, 2 }
 0x59d   : > { %v352_v23 = vadd.f32 %v351_v22, %v350_v21 }
 0x59f   : > { %v353_v24 = vrot.slane %v352_v23, 1 }
 0x5a1   : > { %v354_v25 = vadd.f32 %v353_v24, %v352_v23 }
 0x5a3   : > { %v355_v26 = vsub.f32 %v2014_v9, %v354_v25 }
 0x5a5   : > { %1634 = vrsqrt.f32 %v355_v26 }
 0x5af   : > { %v1635_v27 = vpop.eup %1634 }
 0x5b0   : > { %359 = vperm.xlu0 %1611, %v1635_v27  }
 0x5b4   : > { %1613 = vset.pattern.permute.xlu0 %v1834_v50 }
 0x62f   : > { %v360_v32 = vpop.permute.xlu0 %359 }
 0x630   : > { %v362_v33 = vmul.f32 %v360_v32, %v355_v26 }
 0x632   : > { %v364_v34 = vsel %vm363_vm9, %v362_v33, 0.0 }
 0x633   : > { %v369_v35 = vrot.slane %v364_v34, %v2073_v31 }
 0x635   : > { %v370_v36 = vsel %vm365_vm10, %v369_v35, %v341_v16  ;;  %v2099_v16 = vsub.s32 6, %v2005_v4 }
 0x636   : > { %373 = vperm.xlu1 %1612, %v370_v36  }
 0x6b5   : > { %v374_v37 = vpop.permute.xlu1 %373 }
 0x6b6   : > { %v376_v38 = vmul.f32 %v374_v37, %v370_v36 }
 0x6b8   : > { %v377_v39 = vsel %vm260_vm2, %v376_v38, 0.0 }
 0x6b9   : > { %v378_v40 = vrot.slane %v377_v39, 4 }
 0x6bb   : > { %v379_v41 = vadd.f32 %v378_v40, %v377_v39 }
 0x6bd   : > { %v380_v42 = vrot.slane %v379_v41, 2 }
 0x6bf   : > { %v381_v43 = vadd.f32 %v380_v42, %v379_v41 }
 0x6c1   : > { %v382_v44 = vrot.slane %v381_v43, 1 }
 0x6c3   : > { %v383_v45 = vadd.f32 %v382_v44, %v381_v43 }
 0x6c5   : > { %v384_v46 = vsub.f32 %v2014_v9, %v383_v45 }
 0x6c7   : > { %1636 = vrsqrt.f32 %v384_v46 }
 0x6d1   : > { %v1637_v49 = vpop.eup %1636 }
 0x6d2   : > { %388 = vperm.xlu1 %1612, %v1637_v49  }
 0x6d6   : > { %1614 = vset.pattern.permute.xlu1 %v1834_v50 }
 0x751   : > { %v389_v52 = vpop.permute.xlu1 %388 }
 0x752   : > { %v391_v53 = vmul.f32 %v389_v52, %v384_v46 }
 0x754   : > { %v393_v54 = vsel %vm392_vm11, %v391_v53, 0.0 }
 0x755   : > { %v398_v55 = vrot.slane %v393_v54, %v2087_v51 }
 0x757   : > { %v399_v56 = vsel %vm394_vm12, %v398_v55, %v370_v36 }
 0x758   : > { %402 = vperm.xlu0 %1613, %v399_v56  }
 0x75c   : > { %1616 = vset.pattern.permute.xlu0 %v1835_v15 }
 0x7d7   : > { %v403_v57 = vpop.permute.xlu0 %402 }
 0x7d8   : > { %v405_v58 = vmul.f32 %v403_v57, %v399_v56 }
 0x7da   : > { %v406_v59 = vsel %vm260_vm2, %v405_v58, 0.0 }
 0x7db   : > { %v407_v60 = vrot.slane %v406_v59, 4 }
 0x7dd   : > { %v408_v61 = vadd.f32 %v407_v60, %v406_v59 }
 0x7df   : > { %v409_v62 = vrot.slane %v408_v61, 2 }
 0x7e1   : > { %v410_v63 = vadd.f32 %v409_v62, %v408_v61 }
 0x7e3   : > { %v411_v3 = vrot.slane %v410_v63, 1 }
 0x7e5   : > { %v412_v10 = vadd.f32 %v411_v3, %v410_v63 }
 0x7e7   : > { %v413_v11 = vsub.f32 %v2014_v9, %v412_v10 }
 0x7e9   : > { %1638 = vrsqrt.f32 %v413_v11 }
 0x7f3   : > { %v1639_v14 = vpop.eup %1638 }
 0x7f4   : > { %417 = vperm.xlu1 %1614, %v1639_v14  }
 0x7f8   : > { %1615 = vset.pattern.permute.xlu1 %v1835_v15 }
 0x873   : > { %v418_v17 = vpop.permute.xlu1 %417 }
 0x874   : > { %v420_v18 = vmul.f32 %v418_v17, %v413_v11 }
 0x876   : > { %v422_v19 = vsel %vm421_vm13, %v420_v18, 0.0 }
 0x877   : > { %v427_v20 = vrot.slane %v422_v19, %v2099_v16 }
 0x879   : > { %v428_v21 = vsel %vm423_vm14, %v427_v20, %v399_v56 }
 0x87a   : > { %431 = vperm.xlu1 %1615, %v428_v21  }
 0x87e   : > { %1617 = vset.pattern.permute.xlu1 %v1827_v2  ;;  %v2113_v2 = vsub.s32 7, %v2005_v4 }
 0x8f9   : > { %v432_v22 = vpop.permute.xlu1 %431 }
 0x8fa   : > { %v434_v23 = vmul.f32 %v432_v22, %v428_v21 }
 0x8fc   : > { %v435_v24 = vsel %vm260_vm2, %v434_v23, 0.0 }
 0x8fd   : > { %v436_v25 = vrot.slane %v435_v24, 4 }
 0x8ff   : > { %v437_v26 = vadd.f32 %v436_v25, %v435_v24 }
 0x901   : > { %v438_v27 = vrot.slane %v437_v26, 2 }
 0x903   : > { %v439_v32 = vadd.f32 %v438_v27, %v437_v26 }
 0x905   : > { %v440_v33 = vrot.slane %v439_v32, 1 }
 0x907   : > { %v441_v34 = vadd.f32 %v440_v33, %v439_v32 }
 0x909   : > { %v442_v35 = vsub.f32 %v2014_v9, %v441_v34 }
 0x90b   : > { %1640 = vrsqrt.f32 %v442_v35 }
 0x915   : > { %v1641_v36 = vpop.eup %1640 }
 0x916   : > { %446 = vperm.xlu0 %1616, %v1641_v36  }
 0x91a   : > { %1619 = vset.pattern.permute.xlu0 %v1830_v29 }
 0x995   : > { %v447_v37 = vpop.permute.xlu0 %446 }
 0x996   : > { %v449_v38 = vmul.f32 %v447_v37, %v442_v35 }
 0x998   : > { %v451_v39 = vsel %vm450_vm15, %v449_v38, 0.0 }
 0x999   : > { %v456_v40 = vrot.slane %v451_v39, %v2113_v2 }
 0x99b   : > { %v457_v9 = vsel %vm452_vm0, %v456_v40, %v428_v21 }
 0x99c   : > { %523 = vperm.xlu0 %1619, %v457_v9   ;;  %460 = vperm.xlu1 %1617, %v457_v9  }
 0x9a0   : > { %1622 = vset.pattern.permute.xlu0 %v1833_v28  ;;  %1618 = vset.pattern.permute.xlu1 %v1829_v12 }
 0x9a1   : > { %628 = vperm.xlu0 %1622, %v457_v9   ;;  %488 = vperm.xlu1 %1618, %v457_v9  }
 0x9a5   : > { %1620 = vset.pattern.permute.xlu1 %v1831_v47  ;;  %1625 = vset.pattern.permute.xlu0 %v1835_v15 }
 0x9a6   : > { %558 = vperm.xlu1 %1620, %v457_v9  }
 0x9aa   : > { %1621 = vset.pattern.permute.xlu1 %v1832_v6 }
 0x9ab   : > { %593 = vperm.xlu1 %1621, %v457_v9  }
 0x9af   : > { %1623 = vset.pattern.permute.xlu1 %v1834_v50 }
 0x9b0   : > { %663 = vperm.xlu1 %1623, %v457_v9  }
 0x9b4   : > { %1624 = vset.pattern.permute.xlu1 %v1835_v15 }
 0x9b5   : > { %698 = vperm.xlu1 %1624, %v457_v9  }
 0xa1b   : > { %v461_v29 = vpop.permute.xlu1 %460  ;;  %v524_v26 = vpop.permute.xlu0 %523 }
 0xa1c   : > { %v463_v41 = vmul.f32 0.0, %v461_v29  ;;  %1642 = vrcp.f32 %v461_v29 }
 0xa1e   : > { %v464_v42 = vrot.slane %v463_v41, 4 }
 0xa20   : > { %v465_v28 = vadd.f32 %v464_v42, %v463_v41  ;;  %v489_v56 = vpop.permute.xlu1 %488 }
 0xa21   : > { %1644 = vrcp.f32 %v489_v56 }
 0xa22   : > { %v466_v12 = vrot.slane %v465_v28, 2  ;;  %1646 = vrcp.f32 %v524_v26 }
 0xa24   : > { %v467_v43 = vadd.f32 %v466_v12, %v465_v28 }
 0xa26   : > { %v468_v44 = vrot.slane %v467_v43, 1  ;;  %v1643_v6 = vpop.eup %1642 }
 0xa28   : > { %v469_v45 = vadd.f32 %v468_v44, %v467_v43 }
 0xa2a   : > { %v470_v47 = vsub.f32 %v1998_v1, %v469_v45  ;;  %v471_v46 = vsub.f32 %v1996_v0, %v469_v45 }
 0xa2b   : > { %v1645_v21 = vpop.eup %1644 }
 0xa2c   : > { %v473_v49 = vmul.f32 %v1643_v6, %v470_v47  ;;  %v474_v52 = vmul.f32 %v1643_v6, %v471_v46  ;;  %v1647_v45 = vpop.eup %1646 }
 0xa2e   : > { %v480_v50 = vrot.slane %v473_v49, %v2020_v13  ;;  %v484_v53 = vrot.slane %v474_v52, %v2020_v13 }
 0xa30   : > { %v485_v54 = vsel %vm248_vm1, %v480_v50, 0.0  ;;  %v486_v55 = vsel %vm248_vm1, %v484_v53, 0.0  ;;  %v559_v53 = vpop.permute.xlu1 %558 }
 0xa31   : > { %v491_v57 = vmul.f32 %v489_v56, %v485_v54  ;;  %v492_v58 = vmul.f32 %v489_v56, %v486_v55  ;;  %1648 = vrcp.f32 %v559_v53 }
 0xa33   : > { %v493_v59 = vrot.slane %v491_v57, 4  ;;  %v499_v60 = vrot.slane %v492_v58, 4 }
 0xa35   : > { %v494_v61 = vadd.f32 %v493_v59, %v491_v57  ;;  %v500_v62 = vadd.f32 %v499_v60, %v492_v58 }
 0xa37   : > { %v495_v63 = vrot.slane %v494_v61, 2  ;;  %v501_v3 = vrot.slane %v500_v62, 2 }
 0xa39   : > { %v496_v10 = vadd.f32 %v495_v63, %v494_v61  ;;  %v502_v11 = vadd.f32 %v501_v3, %v500_v62 }
 0xa3b   : > { %v497_v14 = vrot.slane %v496_v10, 1  ;;  %v503_v15 = vrot.slane %v502_v11, 1 }
 0xa3d   : > { %v498_v17 = vadd.f32 %v497_v14, %v496_v10  ;;  %v504_v18 = vadd.f32 %v503_v15, %v502_v11 }
 0xa3f   : > { %v505_v19 = vsub.f32 %v1998_v1, %v498_v17  ;;  %v506_v20 = vsub.f32 %v1996_v0, %v504_v18  ;;  %v1649_v18 = vpop.eup %1648 }
 0xa41   : > { %v508_v22 = vmul.f32 %v1645_v21, %v505_v19  ;;  %v509_v23 = vmul.f32 %v1645_v21, %v506_v20 }
 0xa43   : > { %v515_v24 = vrot.slane %v508_v22, %v2032_v30  ;;  %v519_v25 = vrot.slane %v509_v23, %v2032_v30 }
 0xa45   : > { %v520_v27 = vsel %vm278_vm4, %v515_v24, %v485_v54  ;;  %v521_v32 = vsel %vm278_vm4, %v519_v25, %v486_v55  ;;  %v594_v25 = vpop.permute.xlu1 %593 }
 0xa46   : > { %v526_v33 = vmul.f32 %v524_v26, %v520_v27  ;;  %v527_v34 = vmul.f32 %v524_v26, %v521_v32  ;;  %1650 = vrcp.f32 %v594_v25 }
 0xa48   : > { %v528_v35 = vrot.slane %v526_v33, 4  ;;  %v534_v36 = vrot.slane %v527_v34, 4 }
 0xa4a   : > { %v529_v37 = vadd.f32 %v528_v35, %v526_v33  ;;  %v535_v38 = vadd.f32 %v534_v36, %v527_v34 }
 0xa4c   : > { %v530_v39 = vrot.slane %v529_v37, 2  ;;  %v536_v40 = vrot.slane %v535_v38, 2 }
 0xa4e   : > { %v531_v9 = vadd.f32 %v530_v39, %v529_v37  ;;  %v537_v29 = vadd.f32 %v536_v40, %v535_v38 }
 0xa50   : > { %v532_v41 = vrot.slane %v531_v9, 1  ;;  %v538_v42 = vrot.slane %v537_v29, 1 }
 0xa52   : > { %v533_v28 = vadd.f32 %v532_v41, %v531_v9  ;;  %v539_v12 = vadd.f32 %v538_v42, %v537_v29 }
 0xa54   : > { %v540_v43 = vsub.f32 %v1998_v1, %v533_v28  ;;  %v541_v44 = vsub.f32 %v1996_v0, %v539_v12  ;;  %v1651_v12 = vpop.eup %1650 }
 0xa56   : > { %v543_v47 = vmul.f32 %v1647_v45, %v540_v43  ;;  %v544_v46 = vmul.f32 %v1647_v45, %v541_v44 }
 0xa58   : > { %v550_v6 = vrot.slane %v543_v47, %v2046_v48  ;;  %v554_v49 = vrot.slane %v544_v46, %v2046_v48  ;;  %v629_v46 = vpop.permute.xlu0 %628 }
 0xa59   : > { %1652 = vrcp.f32 %v629_v46 }
 0xa5a   : > { %v555_v52 = vsel %vm307_vm6, %v550_v6, %v520_v27  ;;  %v556_v50 = vsel %vm307_vm6, %v554_v49, %v521_v32 }
 0xa5b   : > { %v561_v54 = vmul.f32 %v559_v53, %v555_v52  ;;  %v562_v55 = vmul.f32 %v559_v53, %v556_v50 }
 0xa5d   : > { %v563_v56 = vrot.slane %v561_v54, 4  ;;  %v569_v57 = vrot.slane %v562_v55, 4 }
 0xa5f   : > { %v564_v58 = vadd.f32 %v563_v56, %v561_v54  ;;  %v570_v59 = vadd.f32 %v569_v57, %v562_v55 }
 0xa61   : > { %v565_v60 = vrot.slane %v564_v58, 2  ;;  %v571_v61 = vrot.slane %v570_v59, 2 }
 0xa63   : > { %v566_v62 = vadd.f32 %v565_v60, %v564_v58  ;;  %v572_v63 = vadd.f32 %v571_v61, %v570_v59 }
 0xa65   : > { %v567_v3 = vrot.slane %v566_v62, 1  ;;  %v573_v10 = vrot.slane %v572_v63, 1 }
 0xa67   : > { %v568_v11 = vadd.f32 %v567_v3, %v566_v62  ;;  %v574_v14 = vadd.f32 %v573_v10, %v572_v63 }
 0xa69   : > { %v575_v15 = vsub.f32 %v1998_v1, %v568_v11  ;;  %v576_v17 = vsub.f32 %v1996_v0, %v574_v14  ;;  %v1653_v14 = vpop.eup %1652 }
 0xa6b   : > { %v578_v19 = vmul.f32 %v1649_v18, %v575_v15  ;;  %v579_v20 = vmul.f32 %v1649_v18, %v576_v17 }
 0xa6d   : > { %v585_v21 = vrot.slane %v578_v19, %v2060_v8  ;;  %v589_v22 = vrot.slane %v579_v20, %v2060_v8 }
 0xa6f   : > { %v590_v23 = vsel %vm336_vm8, %v585_v21, %v555_v52  ;;  %v591_v24 = vsel %vm336_vm8, %v589_v22, %v556_v50  ;;  %v664_v22 = vpop.permute.xlu1 %663 }
 0xa70   : > { %v596_v26 = vmul.f32 %v594_v25, %v590_v23  ;;  %v597_v27 = vmul.f32 %v594_v25, %v591_v24  ;;  %1654 = vrcp.f32 %v664_v22 }
 0xa72   : > { %v598_v32 = vrot.slane %v596_v26, 4  ;;  %v604_v33 = vrot.slane %v597_v27, 4 }
 0xa74   : > { %v599_v34 = vadd.f32 %v598_v32, %v596_v26  ;;  %v605_v35 = vadd.f32 %v604_v33, %v597_v27 }
 0xa76   : > { %v600_v36 = vrot.slane %v599_v34, 2  ;;  %v606_v37 = vrot.slane %v605_v35, 2 }
 0xa78   : > { %v601_v38 = vadd.f32 %v600_v36, %v599_v34  ;;  %v607_v39 = vadd.f32 %v606_v37, %v605_v35 }
 0xa7a   : > { %v602_v40 = vrot.slane %v601_v38, 1  ;;  %v608_v9 = vrot.slane %v607_v39, 1 }
 0xa7c   : > { %v603_v29 = vadd.f32 %v602_v40, %v601_v38  ;;  %v609_v41 = vadd.f32 %v608_v9, %v607_v39 }
 0xa7e   : > { %v610_v42 = vsub.f32 %v1998_v1, %v603_v29  ;;  %v611_v28 = vsub.f32 %v1996_v0, %v609_v41  ;;  %v1655_v41 = vpop.eup %1654 }
 0xa80   : > { %v613_v43 = vmul.f32 %v1651_v12, %v610_v42  ;;  %v614_v44 = vmul.f32 %v1651_v12, %v611_v28 }
 0xa82   : > { %v620_v45 = vrot.slane %v613_v43, %v2073_v31  ;;  %v624_v47 = vrot.slane %v614_v44, %v2073_v31 }
 0xa84   : > { %v625_v6 = vsel %vm365_vm10, %v620_v45, %v590_v23  ;;  %v626_v49 = vsel %vm365_vm10, %v624_v47, %v591_v24  ;;  %v699_v47 = vpop.permute.xlu1 %698 }
 0xa85   : > { %v631_v52 = vmul.f32 %v629_v46, %v625_v6  ;;  %v632_v50 = vmul.f32 %v629_v46, %v626_v49  ;;  %1656 = vrcp.f32 %v699_v47 }
 0xa87   : > { %v633_v53 = vrot.slane %v631_v52, 4  ;;  %v639_v54 = vrot.slane %v632_v50, 4 }
 0xa89   : > { %v634_v55 = vadd.f32 %v633_v53, %v631_v52  ;;  %v640_v56 = vadd.f32 %v639_v54, %v632_v50 }
 0xa8b   : > { %v635_v57 = vrot.slane %v634_v55, 2  ;;  %v641_v58 = vrot.slane %v640_v56, 2 }
 0xa8d   : > { %v636_v59 = vadd.f32 %v635_v57, %v634_v55  ;;  %v642_v60 = vadd.f32 %v641_v58, %v640_v56 }
 0xa8f   : > { %v637_v61 = vrot.slane %v636_v59, 1  ;;  %v643_v62 = vrot.slane %v642_v60, 1 }
 0xa91   : > { %v638_v63 = vadd.f32 %v637_v61, %v636_v59  ;;  %v644_v3 = vadd.f32 %v643_v62, %v642_v60 }
 0xa93   : > { %v645_v10 = vsub.f32 %v1998_v1, %v638_v63  ;;  %v646_v11 = vsub.f32 %v1996_v0, %v644_v3  ;;  %v1657_v3 = vpop.eup %1656 }
 0xa95   : > { %v648_v15 = vmul.f32 %v1653_v14, %v645_v10  ;;  %v649_v17 = vmul.f32 %v1653_v14, %v646_v11 }
 0xa97   : > { %v655_v18 = vrot.slane %v648_v15, %v2087_v51  ;;  %v659_v19 = vrot.slane %v649_v17, %v2087_v51 }
 0xa99   : > { %v660_v20 = vsel %vm394_vm12, %v655_v18, %v625_v6  ;;  %v661_v21 = vsel %vm394_vm12, %v659_v19, %v626_v49 }
 0xa9a   : > { %v666_v23 = vmul.f32 %v664_v22, %v660_v20  ;;  %v667_v24 = vmul.f32 %v664_v22, %v661_v21 }
 0xa9c   : > { %v668_v25 = vrot.slane %v666_v23, 4  ;;  %v674_v26 = vrot.slane %v667_v24, 4 }
 0xa9e   : > { %v669_v27 = vadd.f32 %v668_v25, %v666_v23  ;;  %v675_v32 = vadd.f32 %v674_v26, %v667_v24 }
 0xaa0   : > { %v670_v33 = vrot.slane %v669_v27, 2  ;;  %v676_v34 = vrot.slane %v675_v32, 2 }
 0xaa2   : > { %v671_v35 = vadd.f32 %v670_v33, %v669_v27  ;;  %v677_v36 = vadd.f32 %v676_v34, %v675_v32 }
 0xaa4   : > { %v672_v37 = vrot.slane %v671_v35, 1  ;;  %v678_v38 = vrot.slane %v677_v36, 1 }
 0xaa6   : > { %v673_v39 = vadd.f32 %v672_v37, %v671_v35  ;;  %v679_v40 = vadd.f32 %v678_v38, %v677_v36 }
 0xaa8   : > { %v680_v9 = vsub.f32 %v1998_v1, %v673_v39  ;;  %v681_v29 = vsub.f32 %v1996_v0, %v679_v40 }
 0xaaa   : > { %v683_v42 = vmul.f32 %v1655_v41, %v680_v9  ;;  %v684_v28 = vmul.f32 %v1655_v41, %v681_v29 }
 0xaac   : > { %v690_v12 = vrot.slane %v683_v42, %v2099_v16  ;;  %v694_v43 = vrot.slane %v684_v28, %v2099_v16 }
 0xaae   : > { %v695_v44 = vsel %vm423_vm14, %v690_v12, %v660_v20  ;;  %v696_v45 = vsel %vm423_vm14, %v694_v43, %v661_v21 }
 0xaaf   : > { %v701_v46 = vmul.f32 %v699_v47, %v695_v44  ;;  %v702_v6 = vmul.f32 %v699_v47, %v696_v45 }
 0xab1   : > { %v703_v49 = vrot.slane %v701_v46, 4  ;;  %v709_v52 = vrot.slane %v702_v6, 4 }
 0xab3   : > { %v704_v50 = vadd.f32 %v703_v49, %v701_v46  ;;  %v710_v53 = vadd.f32 %v709_v52, %v702_v6 }
 0xab5   : > { %v705_v54 = vrot.slane %v704_v50, 2  ;;  %v711_v55 = vrot.slane %v710_v53, 2 }
 0xab7   : > { %v706_v56 = vadd.f32 %v705_v54, %v704_v50  ;;  %v712_v57 = vadd.f32 %v711_v55, %v710_v53 }
 0xab9   : > { %v707_v58 = vrot.slane %v706_v56, 1  ;;  %v713_v59 = vrot.slane %v712_v57, 1 }
 0xabb   : > { %v708_v60 = vadd.f32 %v707_v58, %v706_v56  ;;  %v714_v61 = vadd.f32 %v713_v59, %v712_v57 }
 0xabd   : > { %v715_v62 = vsub.f32 %v1998_v1, %v708_v60  ;;  %v716_v63 = vsub.f32 %v1996_v0, %v714_v61  ;;  %735 = sbr.rel (%p2389_p5) target bundleno = 2757 (0xac5), region = 40 }
 0xabf   : > { %v718_v10 = vmul.f32 %v1657_v3, %v715_v62  ;;  %v719_v11 = vmul.f32 %v1657_v3, %v716_v63 }
 0xac1   : > { %v725_v14 = vrot.slane %v718_v10, %v2113_v2  ;;  %v729_v15 = vrot.slane %v719_v11, %v2113_v2 }
 0xac3   : > { %v730_v17 = vsel %vm452_vm0, %v725_v14, %v695_v44  ;;  %v731_v18 = vsel %vm452_vm0, %v729_v15, %v696_v45 }
 0xac4   : > { %736 = vst [vmem:[#allocation7] sm:$0xff] %v730_v17  ;;  %737 = vst [vmem:[#allocation7 + $0x8] sm:$0xff] %v731_v18 }
 0xac5 PF: > { %p1520_p6 = scmp.le.s32.totalorder %s1880_s13, 0 }
 0xac6   : > { %746 = vmatprep.subr.mxu0 (!%p1520_p6), %v731_v18  ;;  %819 = vmatprep.subr.mxu1 (!%p1520_p6), %v731_v18  ;;  %v1836_v19 = vmov (!%p1520_p6), 0.0   ;;  %s1521_s14 = sadd.s32 (!%p1520_p6), 4294967295, %s1880_s13 }
 0xac7   : > { %741 = sbr.rel (%p1520_p6) target bundleno = 3195 (0xc7b), region = 44  ;;  %747 = vmatpush1.xpose.msra.mxu0 (!%p1520_p6), %v730_v17  ;;  %820 = vmatpush1.msra.mxu1 (!%p1520_p6), %v730_v17  ;;  %s743_s15 = sld [smem:[#allocation2 + %s1521_s14]] (!%p1520_p6) }
 0xac8   : > { %883 = vmatprep.mubr.f32.mxu1 (!%p1520_p6), %v1836_v19 }
 0xacb   : > { %v745_v0 = vld [vmem:[#allocation7 + $0x8] sm:$0xff] (!%p1520_p6)  ;;  %v744_v1 = vld [vmem:[#allocation7] sm:$0xff] (!%p1520_p6) }
 0xacc   : > { %810 = vmatprep.mubr.f32.mxu0 (!%p1520_p6), %v745_v0 }
 0xacd   : > { %811 = vmatmul.mubr.f32.vlgmr.msra.gmra.mrb[0].mxu0 (!%p1520_p6), %v744_v1  ;;  %s890_s7 = ssub.f32 (!%p1520_p6), 1.0, %s743_s15  ;;  %v894_v23 = vstv (!%p1520_p6), %s743_s15 }
 0xacf   : > { %v891_v22 = vstv %s890_s7 }
 0xad0   : > { %v892_v24 = vmul.f32 %v891_v22, %v744_v1  ;;  %v893_v25 = vmul.f32 %v891_v22, %v745_v0 }
 0xba0   : > { %v812_v20 = vpop.f32.mrb[0].mxu0 }
 0xba1   : > { %v814_v21 = vpop.f32.mrb[1].mxu0  ;;  %1522 = vmatmul.mubr.msk.f32.vlgmr.msra.gmra.mrb[0].mxu1 %vm260_vm2, %v812_v20 }
 0xc74   : > { %v885_v26 = vpop.f32.mrb[0].mxu1 }
 0xc75   : > { %v895_v27 = vmul.f32 %v894_v23, %v885_v26  ;;  %v887_v32 = vpop.f32.mrb[1].mxu1 }
 0xc76   : > { %v896_v33 = vmul.f32 %v894_v23, %v887_v32 }
 0xc77   : > { %v897_v34 = vadd.f32 %v895_v27, %v892_v24 }
 0xc78   : > { %v898_v35 = vadd.f32 %v896_v33, %v893_v25 }
 0xc79   : > { %899 = vst [vmem:[#allocation7] sm:$0xff] %v897_v34 }
 0xc7a   : > { %900 = vst [vmem:[#allocation7 + $0x8] sm:$0xff] %v898_v35 }
 0xc7b PF: > { %p1523_p8 = scmp.ne.s32.totalorder %s1880_s13, 3 }
 0xc7c   : > { %v1837_v38 = vmov (!%p1523_p8), 0   ;;  %v1838_v41 = vmov (!%p1523_p8), 1   ;;  %v1839_v55 = vmov (!%p1523_p8), 2   ;;  %v1840_v1 = vmov (!%p1523_p8), 3  }
 0xc7d   : > { %904 = sbr.rel (%p1523_p8) target bundleno = 5891 (0x1703), region = 48  ;;  %1658 = vset.pattern.permute.xlu0 (!%p1523_p8), %v1837_v38  ;;  %1660 = vset.pattern.permute.xlu1 (!%p1523_p8), %v1838_v41 }
 0xc80   : > { %v2198_v37 = vld [vmem:[#allocation7] sm:$0xff] (!%p1523_p8) }
 0xc81   : > { %v2196_v36 = vld [vmem:[#allocation7 + $0x8] sm:$0xff] (!%p1523_p8) }
 0xc82   : > { %907 = vmatprep.subr.mxu0 (!%p1523_p8), %v2196_v36  ;;  %971 = vmatprep.mubr.f32.mxu0 (!%p1523_p8), %v2196_v36 }
 0xc83   : > { %908 = vmatpush1.xpose.msra.mxu0 (!%p1523_p8), %v2198_v37 }
 0xc86   : > { %972 = vmatmul.mubr.f32.vlgmr.msra.gmra.mrb[0].mxu0 %v2198_v37 }
 0xd59   : > { %v973_v39 = vpop.f32.mrb[0].mxu0 }
 0xd5a   : > { %v2206_v40 = vadd.f32 %v973_v39, %v2011_v7  ;;  %v975_v9 = vpop.f32.mrb[1].mxu0 }
 0xd5c   : > { %1680 = vrsqrt.f32 %v2206_v40 }
 0xd66   : > { %v1681_v29 = vpop.eup %1680 }
 0xd67   : > { %981 = vperm.xlu0 %1658, %v1681_v29  }
 0xd6b   : > { %1659 = vset.pattern.permute.xlu0 %v1838_v41 }
 0xde6   : > { %v982_v42 = vpop.permute.xlu0 %981 }
 0xde7   : > { %v984_v28 = vmul.f32 %v982_v42, %v2206_v40  ;;  %v1841_v42 = vmov 4  }
 0xde9   : > { %v989_v12 = vrot.slane %v984_v28, %v2020_v13 }
 0xdeb   : > { %v990_v43 = vsel %vm248_vm1, %v989_v12, 0.0 }
 0xdec   : > { %993 = vperm.xlu0 %1659, %v990_v43  }
 0xdf0   : > { %1662 = vset.pattern.permute.xlu0 %v1840_v1 }
 0xe6b   : > { %v994_v7 = vpop.permute.xlu0 %993 }
 0xe6c   : > { %v996_v44 = vmul.f32 %v994_v7, %v990_v43 }
 0xe6e   : > { %v997_v45 = vsel %vm260_vm2, %v996_v44, 0.0 }
 0xe6f   : > { %v998_v47 = vrot.slane %v997_v45, 4 }
 0xe71   : > { %v999_v46 = vadd.f32 %v998_v47, %v997_v45 }
 0xe73   : > { %v1000_v6 = vrot.slane %v999_v46, 2 }
 0xe75   : > { %v1001_v49 = vadd.f32 %v1000_v6, %v999_v46 }
 0xe77   : > { %v1002_v52 = vrot.slane %v1001_v49, 1 }
 0xe79   : > { %v1003_v50 = vadd.f32 %v1002_v52, %v1001_v49 }
 0xe7b   : > { %v1004_v53 = vsub.f32 %v2206_v40, %v1003_v50 }
 0xe7d   : > { %1682 = vrsqrt.f32 %v1004_v53 }
 0xe87   : > { %v1683_v54 = vpop.eup %1682 }
 0xe88   : > { %1008 = vperm.xlu1 %1660, %v1683_v54  }
 0xe8c   : > { %1661 = vset.pattern.permute.xlu1 %v1839_v55 }
 0xf07   : > { %v1009_v56 = vpop.permute.xlu1 %1008 }
 0xf08   : > { %v1011_v57 = vmul.f32 %v1009_v56, %v1004_v53 }
 0xf0a   : > { %v1012_v58 = vsel %vm276_vm3, %v1011_v57, 0.0 }
 0xf0b   : > { %v1016_v59 = vrot.slane %v1012_v58, %v2032_v30  ;;  %v1842_v58 = vmov 5  }
 0xf0d   : > { %v1017_v60 = vsel %vm278_vm4, %v1016_v59, %v990_v43 }
 0xf0e   : > { %1020 = vperm.xlu1 %1661, %v1017_v60  }
 0xf8d   : > { %v1021_v61 = vpop.permute.xlu1 %1020 }
 0xf8e   : > { %v1023_v62 = vmul.f32 %v1021_v61, %v1017_v60 }
 0xf90   : > { %v1024_v63 = vsel %vm260_vm2, %v1023_v62, 0.0 }
 0xf91   : > { %v1025_v3 = vrot.slane %v1024_v63, 4 }
 0xf93   : > { %v1026_v10 = vadd.f32 %v1025_v3, %v1024_v63 }
 0xf95   : > { %v1027_v11 = vrot.slane %v1026_v10, 2 }
 0xf97   : > { %v1028_v14 = vadd.f32 %v1027_v11, %v1026_v10 }
 0xf99   : > { %v1029_v15 = vrot.slane %v1028_v14, 1 }
 0xf9b   : > { %v1030_v17 = vadd.f32 %v1029_v15, %v1028_v14 }
 0xf9d   : > { %v1031_v18 = vsub.f32 %v2206_v40, %v1030_v17 }
 0xf9f   : > { %1684 = vrsqrt.f32 %v1031_v18 }
 0xfa9   : > { %v1685_v0 = vpop.eup %1684 }
 0xfaa   : > { %1035 = vperm.xlu1 %1661, %v1685_v0  }
 0xfae   : > { %1663 = vset.pattern.permute.xlu1 %v1840_v1 }
0x1029   : > { %v1036_v19 = vpop.permute.xlu1 %1035 }
0x102a   : > { %v1038_v20 = vmul.f32 %v1036_v19, %v1031_v18 }
0x102c   : > { %v1039_v21 = vsel %vm305_vm5, %v1038_v20, 0.0 }
0x102d   : > { %v1043_v22 = vrot.slane %v1039_v21, %v2046_v48 }
0x102f   : > { %v1044_v23 = vsel %vm307_vm6, %v1043_v22, %v1017_v60  ;;  %v1843_v22 = vmov 6  }
0x1030   : > { %1047 = vperm.xlu0 %1662, %v1044_v23  }
0x1034   : > { %1665 = vset.pattern.permute.xlu0 %v1841_v42 }
0x10af   : > { %v1048_v24 = vpop.permute.xlu0 %1047 }
0x10b0   : > { %v1050_v25 = vmul.f32 %v1048_v24, %v1044_v23 }
0x10b2   : > { %v1051_v26 = vsel %vm260_vm2, %v1050_v25, 0.0 }
0x10b3   : > { %v1052_v27 = vrot.slane %v1051_v26, 4 }
0x10b5   : > { %v1053_v32 = vadd.f32 %v1052_v27, %v1051_v26 }
0x10b7   : > { %v1054_v33 = vrot.slane %v1053_v32, 2 }
0x10b9   : > { %v1055_v34 = vadd.f32 %v1054_v33, %v1053_v32 }
0x10bb   : > { %v1056_v35 = vrot.slane %v1055_v34, 1 }
0x10bd   : > { %v1057_v39 = vadd.f32 %v1056_v35, %v1055_v34 }
0x10bf   : > { %v1058_v9 = vsub.f32 %v2206_v40, %v1057_v39 }
0x10c1   : > { %1686 = vrsqrt.f32 %v1058_v9 }
0x10cb   : > { %v1687_v29 = vpop.eup %1686 }
0x10cc   : > { %1062 = vperm.xlu1 %1663, %v1687_v29  }
0x10d0   : > { %1664 = vset.pattern.permute.xlu1 %v1841_v42 }
0x114b   : > { %v1063_v28 = vpop.permute.xlu1 %1062 }
0x114c   : > { %v1065_v12 = vmul.f32 %v1063_v28, %v1058_v9 }
0x114e   : > { %v1066_v43 = vsel %vm334_vm7, %v1065_v12, 0.0 }
0x114f   : > { %v1070_v7 = vrot.slane %v1066_v43, %v2060_v8 }
0x1151   : > { %v1071_v44 = vsel %vm336_vm8, %v1070_v7, %v1044_v23 }
0x1152   : > { %1074 = vperm.xlu1 %1664, %v1071_v44  }
0x1156   : > { %1666 = vset.pattern.permute.xlu1 %v1842_v58 }
0x11d1   : > { %v1075_v45 = vpop.permute.xlu1 %1074 }
0x11d2   : > { %v1077_v47 = vmul.f32 %v1075_v45, %v1071_v44 }
0x11d4   : > { %v1078_v46 = vsel %vm260_vm2, %v1077_v47, 0.0 }
0x11d5   : > { %v1079_v6 = vrot.slane %v1078_v46, 4 }
0x11d7   : > { %v1080_v49 = vadd.f32 %v1079_v6, %v1078_v46 }
0x11d9   : > { %v1081_v52 = vrot.slane %v1080_v49, 2 }
0x11db   : > { %v1082_v50 = vadd.f32 %v1081_v52, %v1080_v49 }
0x11dd   : > { %v1083_v53 = vrot.slane %v1082_v50, 1 }
0x11df   : > { %v1084_v54 = vadd.f32 %v1083_v53, %v1082_v50 }
0x11e1   : > { %v1085_v56 = vsub.f32 %v2206_v40, %v1084_v54 }
0x11e3   : > { %1688 = vrsqrt.f32 %v1085_v56 }
0x11ed   : > { %v1689_v57 = vpop.eup %1688 }
0x11ee   : > { %1089 = vperm.xlu0 %1665, %v1689_v57  }
0x11f2   : > { %1667 = vset.pattern.permute.xlu0 %v1843_v22 }
0x126d   : > { %v1090_v59 = vpop.permute.xlu0 %1089 }
0x126e   : > { %v1092_v60 = vmul.f32 %v1090_v59, %v1085_v56 }
0x1270   : > { %v1093_v61 = vsel %vm363_vm9, %v1092_v60, 0.0 }
0x1271   : > { %v1097_v62 = vrot.slane %v1093_v61, %v2073_v31 }
0x1273   : > { %v1098_v63 = vsel %vm365_vm10, %v1097_v62, %v1071_v44  ;;  %v1844_v44 = vmov 7  }
0x1274   : > { %1101 = vperm.xlu1 %1666, %v1098_v63  }
0x12f3   : > { %v1102_v3 = vpop.permute.xlu1 %1101 }
0x12f4   : > { %v1104_v10 = vmul.f32 %v1102_v3, %v1098_v63 }
0x12f6   : > { %v1105_v11 = vsel %vm260_vm2, %v1104_v10, 0.0 }
0x12f7   : > { %v1106_v14 = vrot.slane %v1105_v11, 4 }
0x12f9   : > { %v1107_v15 = vadd.f32 %v1106_v14, %v1105_v11 }
0x12fb   : > { %v1108_v17 = vrot.slane %v1107_v15, 2 }
0x12fd   : > { %v1109_v18 = vadd.f32 %v1108_v17, %v1107_v15 }
0x12ff   : > { %v1110_v0 = vrot.slane %v1109_v18, 1 }
0x1301   : > { %v1111_v19 = vadd.f32 %v1110_v0, %v1109_v18 }
0x1303   : > { %v1112_v20 = vsub.f32 %v2206_v40, %v1111_v19 }
0x1305   : > { %1690 = vrsqrt.f32 %v1112_v20 }
0x130f   : > { %v1691_v21 = vpop.eup %1690 }
0x1310   : > { %1116 = vperm.xlu1 %1666, %v1691_v21  }
0x1314   : > { %1668 = vset.pattern.permute.xlu1 %v1843_v22 }
0x138f   : > { %v1117_v23 = vpop.permute.xlu1 %1116 }
0x1390   : > { %v1119_v24 = vmul.f32 %v1117_v23, %v1112_v20 }
0x1392   : > { %v1120_v25 = vsel %vm392_vm11, %v1119_v24, 0.0 }
0x1393   : > { %v1124_v26 = vrot.slane %v1120_v25, %v2087_v51 }
0x1395   : > { %v1125_v27 = vsel %vm394_vm12, %v1124_v26, %v1098_v63 }
0x1396   : > { %1128 = vperm.xlu0 %1667, %v1125_v27  }
0x139a   : > { %1670 = vset.pattern.permute.xlu0 %v1844_v44 }
0x1415   : > { %v1129_v32 = vpop.permute.xlu0 %1128 }
0x1416   : > { %v1131_v33 = vmul.f32 %v1129_v32, %v1125_v27 }
0x1418   : > { %v1132_v34 = vsel %vm260_vm2, %v1131_v33, 0.0 }
0x1419   : > { %v1133_v35 = vrot.slane %v1132_v34, 4 }
0x141b   : > { %v1134_v39 = vadd.f32 %v1133_v35, %v1132_v34 }
0x141d   : > { %v1135_v9 = vrot.slane %v1134_v39, 2 }
0x141f   : > { %v1136_v29 = vadd.f32 %v1135_v9, %v1134_v39 }
0x1421   : > { %v1137_v28 = vrot.slane %v1136_v29, 1 }
0x1423   : > { %v1138_v12 = vadd.f32 %v1137_v28, %v1136_v29 }
0x1425   : > { %v1139_v43 = vsub.f32 %v2206_v40, %v1138_v12 }
0x1427   : > { %1692 = vrsqrt.f32 %v1139_v43 }
0x1431   : > { %v1693_v7 = vpop.eup %1692 }
0x1432   : > { %1143 = vperm.xlu1 %1668, %v1693_v7  }
0x1436   : > { %1669 = vset.pattern.permute.xlu1 %v1844_v44 }
0x14b1   : > { %v1144_v45 = vpop.permute.xlu1 %1143 }
0x14b2   : > { %v1146_v47 = vmul.f32 %v1144_v45, %v1139_v43 }
0x14b4   : > { %v1147_v46 = vsel %vm421_vm13, %v1146_v47, 0.0 }
0x14b5   : > { %v1151_v6 = vrot.slane %v1147_v46, %v2099_v16 }
0x14b7   : > { %v1152_v49 = vsel %vm423_vm14, %v1151_v6, %v1125_v27 }
0x14b8   : > { %1155 = vperm.xlu1 %1669, %v1152_v49  }
0x14bc   : > { %1671 = vset.pattern.permute.xlu1 %v1837_v38 }
0x1537   : > { %v1156_v52 = vpop.permute.xlu1 %1155 }
0x1538   : > { %v1158_v50 = vmul.f32 %v1156_v52, %v1152_v49 }
0x153a   : > { %v1159_v53 = vsel %vm260_vm2, %v1158_v50, 0.0 }
0x153b   : > { %v1160_v54 = vrot.slane %v1159_v53, 4 }
0x153d   : > { %v1161_v56 = vadd.f32 %v1160_v54, %v1159_v53 }
0x153f   : > { %v1162_v57 = vrot.slane %v1161_v56, 2 }
0x1541   : > { %v1163_v59 = vadd.f32 %v1162_v57, %v1161_v56 }
0x1543   : > { %v1164_v60 = vrot.slane %v1163_v59, 1 }
0x1545   : > { %v1165_v61 = vadd.f32 %v1164_v60, %v1163_v59 }
0x1547   : > { %v1166_v62 = vsub.f32 %v2206_v40, %v1165_v61 }
0x1549   : > { %1694 = vrsqrt.f32 %v1166_v62 }
0x1553   : > { %v1695_v63 = vpop.eup %1694 }
0x1554   : > { %1170 = vperm.xlu0 %1670, %v1695_v63  }
0x1558   : > { %1673 = vset.pattern.permute.xlu0 %v1839_v55 }
0x15d3   : > { %v1171_v3 = vpop.permute.xlu0 %1170 }
0x15d4   : > { %v1173_v10 = vmul.f32 %v1171_v3, %v1166_v62 }
0x15d6   : > { %v1174_v38 = vsel %vm450_vm15, %v1173_v10, 0.0 }
0x15d7   : > { %v1178_v11 = vrot.slane %v1174_v38, %v2113_v2 }
0x15d9   : > { %v1179_v14 = vsel %vm452_vm0, %v1178_v11, %v1152_v49 }
0x15da   : > { %1241 = vperm.xlu0 %1673, %v1179_v14   ;;  %1182 = vperm.xlu1 %1671, %v1179_v14  }
0x15de   : > { %1676 = vset.pattern.permute.xlu0 %v1842_v58  ;;  %1672 = vset.pattern.permute.xlu1 %v1838_v41 }
0x15df   : > { %1340 = vperm.xlu0 %1676, %v1179_v14   ;;  %1208 = vperm.xlu1 %1672, %v1179_v14  }
0x15e3   : > { %1674 = vset.pattern.permute.xlu1 %v1840_v1  ;;  %1679 = vset.pattern.permute.xlu0 %v1844_v44 }
0x15e4   : > { %1274 = vperm.xlu1 %1674, %v1179_v14  }
0x15e8   : > { %1675 = vset.pattern.permute.xlu1 %v1841_v42 }
0x15e9   : > { %1307 = vperm.xlu1 %1675, %v1179_v14  }
0x15ed   : > { %1677 = vset.pattern.permute.xlu1 %v1843_v22 }
0x15ee   : > { %1373 = vperm.xlu1 %1677, %v1179_v14  }
0x15f2   : > { %1678 = vset.pattern.permute.xlu1 %v1844_v44 }
0x15f3   : > { %1406 = vperm.xlu1 %1678, %v1179_v14  }
0x1659   : > { %v1183_v5 = vpop.permute.xlu1 %1182  ;;  %v1242_v50 = vpop.permute.xlu0 %1241 }
0x165a   : > { %v1185_v40 = vmul.f32 0.0, %v1183_v5  ;;  %1696 = vrcp.f32 %v1183_v5 }
0x165c   : > { %v1186_v55 = vrot.slane %v1185_v40, 4 }
0x165e   : > { %v1187_v15 = vadd.f32 %v1186_v55, %v1185_v40  ;;  %v1209_v25 = vpop.permute.xlu1 %1208 }
0x165f   : > { %1698 = vrcp.f32 %v1209_v25 }
0x1660   : > { %v1188_v58 = vrot.slane %v1187_v15, 2  ;;  %1700 = vrcp.f32 %v1242_v50 }
0x1662   : > { %v1189_v41 = vadd.f32 %v1188_v58, %v1187_v15 }
0x1664   : > { %v1190_v17 = vrot.slane %v1189_v41, 1  ;;  %v1697_v19 = vpop.eup %1696 }
0x1666   : > { %v1191_v18 = vadd.f32 %v1190_v17, %v1189_v41 }
0x1668   : > { %v1192_v1 = vsub.f32 %v2198_v37, %v1191_v18  ;;  %v1193_v0 = vsub.f32 %v2196_v36, %v1191_v18 }
0x1669   : > { %v1699_v47 = vpop.eup %1698 }
0x166a   : > { %v1195_v42 = vmul.f32 %v1697_v19, %v1192_v1  ;;  %v1196_v20 = vmul.f32 %v1697_v19, %v1193_v0  ;;  %v1701_v15 = vpop.eup %1700  ;;  %v1275_v19 = vpop.permute.xlu1 %1274 }
0x166b   : > { %1702 = vrcp.f32 %v1275_v19 }
0x166c   : > { %v1200_v21 = vrot.slane %v1195_v42, %v2020_v13  ;;  %v1204_v22 = vrot.slane %v1196_v20, %v2020_v13 }
0x166e   : > { %v1205_v23 = vsel %vm248_vm1, %v1200_v21, 0.0  ;;  %v1206_v24 = vsel %vm248_vm1, %v1204_v22, 0.0 }
0x166f   : > { %v1211_v26 = vmul.f32 %v1209_v25, %v1205_v23  ;;  %v1212_v27 = vmul.f32 %v1209_v25, %v1206_v24 }
0x1671   : > { %v1213_v32 = vrot.slane %v1211_v26, 4  ;;  %v1219_v33 = vrot.slane %v1212_v27, 4 }
0x1673   : > { %v1214_v34 = vadd.f32 %v1213_v32, %v1211_v26  ;;  %v1220_v35 = vadd.f32 %v1219_v33, %v1212_v27 }
0x1675   : > { %v1215_v39 = vrot.slane %v1214_v34, 2  ;;  %v1221_v9 = vrot.slane %v1220_v35, 2 }
0x1677   : > { %v1216_v29 = vadd.f32 %v1215_v39, %v1214_v34  ;;  %v1222_v28 = vadd.f32 %v1221_v9, %v1220_v35 }
0x1679   : > { %v1217_v12 = vrot.slane %v1216_v29, 1  ;;  %v1223_v13 = vrot.slane %v1222_v28, 1 }
0x167b   : > { %v1218_v43 = vadd.f32 %v1217_v12, %v1216_v29  ;;  %v1224_v7 = vadd.f32 %v1223_v13, %v1222_v28  ;;  %v1703_v29 = vpop.eup %1702 }
0x167d   : > { %v1225_v44 = vsub.f32 %v2198_v37, %v1218_v43  ;;  %v1226_v45 = vsub.f32 %v2196_v36, %v1224_v7 }
0x167f   : > { %v1228_v46 = vmul.f32 %v1699_v47, %v1225_v44  ;;  %v1229_v6 = vmul.f32 %v1699_v47, %v1226_v45  ;;  %v1308_v45 = vpop.permute.xlu1 %1307 }
0x1680   : > { %1704 = vrcp.f32 %v1308_v45 }
0x1681   : > { %v1233_v49 = vrot.slane %v1228_v46, %v2032_v30  ;;  %v1237_v52 = vrot.slane %v1229_v6, %v2032_v30 }
0x1683   : > { %v1238_v53 = vsel %vm278_vm4, %v1233_v49, %v1205_v23  ;;  %v1239_v54 = vsel %vm278_vm4, %v1237_v52, %v1206_v24 }
0x1684   : > { %v1244_v56 = vmul.f32 %v1242_v50, %v1238_v53  ;;  %v1245_v57 = vmul.f32 %v1242_v50, %v1239_v54 }
0x1686   : > { %v1246_v59 = vrot.slane %v1244_v56, 4  ;;  %v1252_v60 = vrot.slane %v1245_v57, 4 }
0x1688   : > { %v1247_v61 = vadd.f32 %v1246_v59, %v1244_v56  ;;  %v1253_v62 = vadd.f32 %v1252_v60, %v1245_v57 }
0x168a   : > { %v1248_v63 = vrot.slane %v1247_v61, 2  ;;  %v1254_v3 = vrot.slane %v1253_v62, 2 }
0x168c   : > { %v1249_v10 = vadd.f32 %v1248_v63, %v1247_v61  ;;  %v1255_v38 = vadd.f32 %v1254_v3, %v1253_v62  ;;  %v1705_v3 = vpop.eup %1704 }
0x168e   : > { %v1250_v11 = vrot.slane %v1249_v10, 1  ;;  %v1256_v30 = vrot.slane %v1255_v38, 1 }
0x1690   : > { %v1251_v14 = vadd.f32 %v1250_v11, %v1249_v10  ;;  %v1257_v5 = vadd.f32 %v1256_v30, %v1255_v38 }
0x1692   : > { %v1258_v40 = vsub.f32 %v2198_v37, %v1251_v14  ;;  %v1259_v55 = vsub.f32 %v2196_v36, %v1257_v5  ;;  %v1341_v14 = vpop.permute.xlu0 %1340 }
0x1693   : > { %1706 = vrcp.f32 %v1341_v14 }
0x1694   : > { %v1261_v58 = vmul.f32 %v1701_v15, %v1258_v40  ;;  %v1262_v41 = vmul.f32 %v1701_v15, %v1259_v55 }
0x1696   : > { %v1266_v17 = vrot.slane %v1261_v58, %v2046_v48  ;;  %v1270_v18 = vrot.slane %v1262_v41, %v2046_v48 }
0x1698   : > { %v1271_v1 = vsel %vm307_vm6, %v1266_v17, %v1238_v53  ;;  %v1272_v0 = vsel %vm307_vm6, %v1270_v18, %v1239_v54 }
0x1699   : > { %v1277_v42 = vmul.f32 %v1275_v19, %v1271_v1  ;;  %v1278_v20 = vmul.f32 %v1275_v19, %v1272_v0 }
0x169b   : > { %v1279_v21 = vrot.slane %v1277_v42, 4  ;;  %v1285_v22 = vrot.slane %v1278_v20, 4 }
0x169d   : > { %v1280_v23 = vadd.f32 %v1279_v21, %v1277_v42  ;;  %v1286_v24 = vadd.f32 %v1285_v22, %v1278_v20 }
0x169f   : > { %v1281_v25 = vrot.slane %v1280_v23, 2  ;;  %v1287_v26 = vrot.slane %v1286_v24, 2 }
0x16a1   : > { %v1282_v27 = vadd.f32 %v1281_v25, %v1280_v23  ;;  %v1288_v32 = vadd.f32 %v1287_v26, %v1286_v24  ;;  %v1707_v25 = vpop.eup %1706 }
0x16a3   : > { %v1283_v33 = vrot.slane %v1282_v27, 1  ;;  %v1289_v48 = vrot.slane %v1288_v32, 1 }
0x16a5   : > { %v1284_v34 = vadd.f32 %v1283_v33, %v1282_v27  ;;  %v1290_v35 = vadd.f32 %v1289_v48, %v1288_v32 }
0x16a7   : > { %v1291_v39 = vsub.f32 %v2198_v37, %v1284_v34  ;;  %v1292_v9 = vsub.f32 %v2196_v36, %v1290_v35  ;;  %v1374_v35 = vpop.permute.xlu1 %1373 }
0x16a8   : > { %1708 = vrcp.f32 %v1374_v35 }
0x16a9   : > { %v1294_v28 = vmul.f32 %v1703_v29, %v1291_v39  ;;  %v1295_v12 = vmul.f32 %v1703_v29, %v1292_v9 }
0x16ab   : > { %v1299_v13 = vrot.slane %v1294_v28, %v2060_v8  ;;  %v1303_v43 = vrot.slane %v1295_v12, %v2060_v8 }
0x16ad   : > { %v1304_v7 = vsel %vm336_vm8, %v1299_v13, %v1271_v1  ;;  %v1305_v44 = vsel %vm336_vm8, %v1303_v43, %v1272_v0 }
0x16ae   : > { %v1310_v47 = vmul.f32 %v1308_v45, %v1304_v7  ;;  %v1311_v46 = vmul.f32 %v1308_v45, %v1305_v44 }
0x16b0   : > { %v1312_v6 = vrot.slane %v1310_v47, 4  ;;  %v1318_v49 = vrot.slane %v1311_v46, 4 }
0x16b2   : > { %v1313_v52 = vadd.f32 %v1312_v6, %v1310_v47  ;;  %v1319_v50 = vadd.f32 %v1318_v49, %v1311_v46 }
0x16b4   : > { %v1314_v53 = vrot.slane %v1313_v52, 2  ;;  %v1320_v54 = vrot.slane %v1319_v50, 2 }
0x16b6   : > { %v1315_v56 = vadd.f32 %v1314_v53, %v1313_v52  ;;  %v1321_v57 = vadd.f32 %v1320_v54, %v1319_v50  ;;  %v1709_v50 = vpop.eup %1708 }
0x16b8   : > { %v1316_v59 = vrot.slane %v1315_v56, 1  ;;  %v1322_v8 = vrot.slane %v1321_v57, 1 }
0x16ba   : > { %v1317_v60 = vadd.f32 %v1316_v59, %v1315_v56  ;;  %v1323_v61 = vadd.f32 %v1322_v8, %v1321_v57 }
0x16bc   : > { %v1324_v62 = vsub.f32 %v2198_v37, %v1317_v60  ;;  %v1325_v63 = vsub.f32 %v2196_v36, %v1323_v61  ;;  %v1407_v60 = vpop.permute.xlu1 %1406 }
0x16bd   : > { %1710 = vrcp.f32 %v1407_v60 }
0x16be   : > { %v1327_v10 = vmul.f32 %v1705_v3, %v1324_v62  ;;  %v1328_v38 = vmul.f32 %v1705_v3, %v1325_v63 }
0x16c0   : > { %v1332_v11 = vrot.slane %v1327_v10, %v2073_v31  ;;  %v1336_v30 = vrot.slane %v1328_v38, %v2073_v31 }
0x16c2   : > { %v1337_v5 = vsel %vm365_vm10, %v1332_v11, %v1304_v7  ;;  %v1338_v40 = vsel %vm365_vm10, %v1336_v30, %v1305_v44 }
0x16c3   : > { %v1343_v55 = vmul.f32 %v1341_v14, %v1337_v5  ;;  %v1344_v15 = vmul.f32 %v1341_v14, %v1338_v40 }
0x16c5   : > { %v1345_v58 = vrot.slane %v1343_v55, 4  ;;  %v1351_v41 = vrot.slane %v1344_v15, 4 }
0x16c7   : > { %v1346_v17 = vadd.f32 %v1345_v58, %v1343_v55  ;;  %v1352_v18 = vadd.f32 %v1351_v41, %v1344_v15 }
0x16c9   : > { %v1347_v1 = vrot.slane %v1346_v17, 2  ;;  %v1353_v0 = vrot.slane %v1352_v18, 2 }
0x16cb   : > { %v1348_v19 = vadd.f32 %v1347_v1, %v1346_v17  ;;  %v1354_v42 = vadd.f32 %v1353_v0, %v1352_v18  ;;  %v1711_v17 = vpop.eup %1710 }
0x16cd   : > { %v1349_v20 = vrot.slane %v1348_v19, 1  ;;  %v1355_v31 = vrot.slane %v1354_v42, 1 }
0x16cf   : > { %v1350_v21 = vadd.f32 %v1349_v20, %v1348_v19  ;;  %v1356_v22 = vadd.f32 %v1355_v31, %v1354_v42 }
0x16d1   : > { %v1357_v23 = vsub.f32 %v2198_v37, %v1350_v21  ;;  %v1358_v24 = vsub.f32 %v2196_v36, %v1356_v22 }
0x16d3   : > { %v1360_v26 = vmul.f32 %v1707_v25, %v1357_v23  ;;  %v1361_v27 = vmul.f32 %v1707_v25, %v1358_v24 }
0x16d5   : > { %v1365_v32 = vrot.slane %v1360_v26, %v2087_v51  ;;  %v1369_v33 = vrot.slane %v1361_v27, %v2087_v51 }
0x16d7   : > { %v1370_v48 = vsel %vm394_vm12, %v1365_v32, %v1337_v5  ;;  %v1371_v34 = vsel %vm394_vm12, %v1369_v33, %v1338_v40 }
0x16d8   : > { %v1376_v39 = vmul.f32 %v1374_v35, %v1370_v48  ;;  %v1377_v9 = vmul.f32 %v1374_v35, %v1371_v34 }
0x16da   : > { %v1378_v29 = vrot.slane %v1376_v39, 4  ;;  %v1384_v28 = vrot.slane %v1377_v9, 4 }
0x16dc   : > { %v1379_v12 = vadd.f32 %v1378_v29, %v1376_v39  ;;  %v1385_v13 = vadd.f32 %v1384_v28, %v1377_v9 }
0x16de   : > { %v1380_v43 = vrot.slane %v1379_v12, 2  ;;  %v1386_v7 = vrot.slane %v1385_v13, 2 }
0x16e0   : > { %v1381_v44 = vadd.f32 %v1380_v43, %v1379_v12  ;;  %v1387_v45 = vadd.f32 %v1386_v7, %v1385_v13 }
0x16e2   : > { %v1382_v47 = vrot.slane %v1381_v44, 1  ;;  %v1388_v51 = vrot.slane %v1387_v45, 1 }
0x16e4   : > { %v1383_v46 = vadd.f32 %v1382_v47, %v1381_v44  ;;  %v1389_v6 = vadd.f32 %v1388_v51, %v1387_v45 }
0x16e6   : > { %v1390_v49 = vsub.f32 %v2198_v37, %v1383_v46  ;;  %v1391_v52 = vsub.f32 %v2196_v36, %v1389_v6 }
0x16e8   : > { %v1393_v53 = vmul.f32 %v1709_v50, %v1390_v49  ;;  %v1394_v54 = vmul.f32 %v1709_v50, %v1391_v52 }
0x16ea   : > { %v1398_v56 = vrot.slane %v1393_v53, %v2099_v16  ;;  %v1402_v57 = vrot.slane %v1394_v54, %v2099_v16 }
0x16ec   : > { %v1403_v59 = vsel %vm423_vm14, %v1398_v56, %v1370_v48  ;;  %v1404_v8 = vsel %vm423_vm14, %v1402_v57, %v1371_v34 }
0x16ed   : > { %v1409_v61 = vmul.f32 %v1407_v60, %v1403_v59  ;;  %v1410_v62 = vmul.f32 %v1407_v60, %v1404_v8 }
0x16ef   : > { %v1411_v63 = vrot.slane %v1409_v61, 4  ;;  %v1417_v3 = vrot.slane %v1410_v62, 4 }
0x16f1   : > { %v1412_v10 = vadd.f32 %v1411_v63, %v1409_v61  ;;  %v1418_v38 = vadd.f32 %v1417_v3, %v1410_v62 }
0x16f3   : > { %v1413_v11 = vrot.slane %v1412_v10, 2  ;;  %v1419_v30 = vrot.slane %v1418_v38, 2 }
0x16f5   : > { %v1414_v14 = vadd.f32 %v1413_v11, %v1412_v10  ;;  %v1420_v5 = vadd.f32 %v1419_v30, %v1418_v38 }
0x16f7   : > { %v1415_v40 = vrot.slane %v1414_v14, 1  ;;  %v1421_v16 = vrot.slane %v1420_v5, 1 }
0x16f9   : > { %v1416_v55 = vadd.f32 %v1415_v40, %v1414_v14  ;;  %v1422_v15 = vadd.f32 %v1421_v16, %v1420_v5 }
0x16fb   : > { %v1423_v58 = vsub.f32 %v2198_v37, %v1416_v55  ;;  %v1424_v41 = vsub.f32 %v2196_v36, %v1422_v15 }
0x16fd   : > { %v1426_v18 = vmul.f32 %v1711_v17, %v1423_v58  ;;  %v1427_v1 = vmul.f32 %v1711_v17, %v1424_v41 }
0x16ff   : > { %v1431_v0 = vrot.slane %v1426_v18, %v2113_v2  ;;  %v1435_v19 = vrot.slane %v1427_v1, %v2113_v2 }
0x1701   : > { %v1436_v42 = vsel %vm452_vm0, %v1431_v0, %v1403_v59  ;;  %v1437_v20 = vsel %vm452_vm0, %v1435_v19, %v1404_v8 }
0x1702   : > { %1438 = vst [vmem:[#allocation7] sm:$0xff] %v1436_v42  ;;  %1439 = vst [vmem:[#allocation7 + $0x8] sm:$0xff] %v1437_v20 }
0x1703 PF: > { %p1550_p3 = scmp.eq.s32.totalorder %s1880_s13, 3  ;;  %s1845_s8 = smov [#allocation7]  }
0x1704   : > { %s1447_s9 = sshll.u32 %s1845_s8, 4  ;;  %s1448_s9 = int_to_ptr.vmem [resolvable:$true] %s1447_s9 }
0x1705   : > { %s1755_s17 = scalar_lea.vmem %s1448_s9, 256  ;;  %p1762_p11 = scmp.lt.s32.totalorder %s1448_s9, %s1448_s9 }
0x1706   : > { %p1756_p7 = scmp.ne.s32.totalorder %s1448_s9, %s1755_s17  ;;  %p1763_p12 = scmp.lt.s32.totalorder %s1755_s17, %s1755_s17 }
0x1708   : > { %p1757_p4 = pnand %p1756_p7, %p1550_p3  ;;  %p1764_p0 = por %p1763_p12, %p1762_p11 }
0x170a   : > { %p1758_p9 = pneg %p1757_p4 }
0x170c   : > { %p1765_p2 = pnand %p1764_p0, %p1758_p9 }
0x170e   : > { %1768 = shalt.err (!%p1765_p2)
}
0x170f   : > { %s1769_s20 = scalar_lea.hbm %s2378_s2, 256 }
0x1710   : > { %p1770_p10 = scmp.ne.s32.totalorder %s2378_s2, %s1769_s20  ;;  %p1775_p5 = scmp.lt.u32.totalorder %s1769_s20, %s2378_s2 }
0x1712   : > { %p1771_p13 = pnand %p1770_p10, %p1550_p3 }
0x1714   : > { %p1772_p1 = pneg %p1771_p13 }
0x1716   : > { %p1777_p6 = pnand %p1775_p5, %p1772_p1 }
0x1718   : > { %1780 = shalt.err (!%p1777_p6)
}
0x1719   : > { %1536 = dma.vmem_to_hbm [thread:$0]  (%p1550_p3), %s1448_s9, 256, %s2378_s2, [#allocation4]  }
0x171a   : > { %1806 = dma.done.wait (%p1550_p3), [#allocation4], 256  }
0x171b   : > { %1808 = vsyncadd (%p1550_p3), [#allocation4], 4294967040 }
0x171c PF: > { %p14_p8 = scmp.ge.s32.totalorder %s1898_s16, 6   ;;  %s2390_s9 = smov %s1815_s10 }
0x171d   : > { %s2391_s10 = smov %s1819_s11  ;;  %s2392_s11 = smov %s1938_s3 }
0x171e   : > { %s2393_s12 = smov %s1898_s16  ;;  %16 = sbr.rel (!%p14_p8) target bundleno = 5 (0x5), region = 82 }
0x1725   :  { %1460 = vsyncpa [#allocation3], 1 }
0x1726   :  { %1462 = vsyncpa [#allocation3 + $0x1], 1 }
0x1727   :  { %1463 = vsyncpa [#allocation4], 1 }
0x1728   :  { %1465 = vsyncpa [#allocation4 + $0x1], 1 }
0x1729   :  { %1466 = vsyncpa [#allocation5], 1 }
0x172a   :  { %1468 = vsyncpa [#allocation5 + $0x1], 1 }

</bundles_post_ra>
